<compile_context>
chip_gen: v7x
topology: tpu7x:2x2x1
jax: 0.10.0
libtpu: 0.0.40
codegen_flags: <defaults>
</compile_context>

<pallas_src>
import functools
import math

import numpy as np
import jax
import jax.numpy as jnp
from jax.experimental import pallas as pl
from jax.experimental.pallas import tpu as pltpu

_MIB = 1024 * 1024


# ----------------------------------------------------------------------------
# helpers
# ----------------------------------------------------------------------------

def _silu(y):
    # exact sigmoid via tanh: one EUP op per element, accurate in f32.
    return y * (0.5 * jnp.tanh(0.5 * y) + 0.5)


def _sigmoid(y):
    return 0.5 * jnp.tanh(0.5 * y) + 0.5


def _vmem_capacity_bytes():
    try:
        return int(pltpu.get_tpu_info().vmem_capacity_bytes)
    except Exception:
        return 64 * _MIB          # conservative default (v7x per-core VMEM)


def _vmem_limit(est_bytes):
    # 2x headroom over the static estimate, capped at 75% of physical VMEM so
    # the compiler keeps slack for double-buffer/semaphore/internal scratch.
    cap = int(_vmem_capacity_bytes() * 0.75)
    return int(min(max(2 * est_bytes, 32 * _MIB), cap))


def _pick_row_tile(m, target=2048):
    """Large lane-dense row tile for the 1x1 conv; pl.cdiv grid handles the tail."""
    return m if m <= target else target


def _pick_spatial_tile(hw, target=2048):
    """Largest divisor of hw <= target, preferring bf16-friendly multiples of 16.
    Exact divisibility keeps the ECA pooled-sum free of partial tiles."""
    if hw <= target:
        return hw
    divs = [d for d in range(8, min(target, hw) + 1) if hw % d == 0]
    for align in (16, 8):
        good = [d for d in divs if d % align == 0]
        if good:
            return max(good)
    return divs[-1] if divs else hw


def _bottleneck_vmem_est(th, W, C, act_bytes=2):
    band = th * W * C * act_bytes
    halo = 2 * W * C * act_bytes
    io = 2 * (band + 2 * halo) + 2 * band                    # double-buffered in + out
    weights = 2 * 2 * 9 * C * C * 2                          # two bf16 (3,3C,C), double-buffered
    scratch = ((th + 4) + (th + 2)) * (W + 2) * C * act_bytes
    temps = (th + 2) * W * (3 * C * act_bytes + 2 * C * 4)   # dx-concat patch + f32 acc/mid
    return io + weights + scratch + temps


def _pick_band_rows(H, W, C, act_bytes=2):
    """Largest even divisor of H whose working set fits the per-gen VMEM budget."""
    budget = _vmem_capacity_bytes() // 3
    divs = [d for d in range(H, 1, -1) if H % d == 0 and d % 2 == 0]
    for th in divs:
        if _bottleneck_vmem_est(th, W, C, act_bytes) <= budget:
            return th
    return divs[-1] if divs else H


# ----------------------------------------------------------------------------
# cv1: 1x1 conv + SiLU (single fused weight), emits (M, 2c) slab and y1 half
# ----------------------------------------------------------------------------

def _cv1_kernel(x_ref, w_ref, ycat_ref, y1_ref, *, c):
    # one lane-dense bf16 dot against the fused (Cin, 2c) weight
    y = jnp.dot(x_ref[...], w_ref[...], preferred_element_type=jnp.float32)
    a = _silu(y)
    ycat_ref[...] = a.astype(ycat_ref.dtype)
    y1_ref[...] = a[:, c:].astype(y1_ref.dtype)


def cv1_silu(x_flat, w_cat, c, out_dtype):
    """x_flat: (M, Cin) bf16 ; w_cat: (Cin, 2c) bf16 -> ((M, 2c), (M, c))."""
    M, cin = x_flat.shape
    c2x = w_cat.shape[1]
    tm = _pick_row_tile(M)
    ab = jnp.dtype(out_dtype).itemsize
    est = (2 * tm * cin * x_flat.dtype.itemsize
           + 2 * tm * (c2x + c) * ab
           + 2 * cin * c2x * w_cat.dtype.itemsize
           + 2 * tm * c2x * 4)
    return pl.pallas_call(
        functools.partial(_cv1_kernel, c=c),
        out_shape=(jax.ShapeDtypeStruct((M, c2x), out_dtype),
                   jax.ShapeDtypeStruct((M, c), out_dtype)),
        grid=(pl.cdiv(M, tm),),
        in_specs=[pl.BlockSpec((tm, cin), lambda i: (i, 0)),
                  pl.BlockSpec((cin, c2x), lambda i: (0, 0))],
        out_specs=(pl.BlockSpec((tm, c2x), lambda i: (i, 0)),
                   pl.BlockSpec((tm, c), lambda i: (i, 0))),
        compiler_params=pltpu.CompilerParams(
            dimension_semantics=("parallel",),
            vmem_limit_bytes=_vmem_limit(est)),
    )(x_flat, w_cat)


# ----------------------------------------------------------------------------
# Bottleneck (shortcut=False): two fused 3x3 Conv+SiLU, row-band tiled w/ halo
# ----------------------------------------------------------------------------

def _bottleneck_kernel(core_ref, top_ref, bot_ref, w1_ref, w2_ref, o_ref,
                       xpad, mpad):
    # core_ref: (1, th, W, C)   top_ref/bot_ref: (1, 2, W, C) halo bands
    # w*_ref: (3, 3*C, C) bf16  o_ref: (1, th, W, C)
    # xpad: VMEM (th+4, W+2, C) bf16 ; mpad: VMEM (th+2, W+2, C) bf16
    t = pl.program_id(1)
    last = pl.num_programs(1) - 1
    _, th, W, C = o_ref.shape

    # stage the zero-padded input band in VMEM via ref stores (no value concat)
    xpad[...] = jnp.zeros_like(xpad)
    xpad[2:2 + th, 1:W + 1, :] = core_ref[0]

    @pl.when(t > 0)
    def _():
        xpad[0:2, 1:W + 1, :] = top_ref[0]

    @pl.when(t < last)
    def _():
        xpad[2 + th:4 + th, 1:W + 1, :] = bot_ref[0]

    def conv3x3_silu(src, rows, w_ref):
        # dx folded into the contraction -> 3 bf16 matmuls with K = 3*C;
        # the partial sums live in a local f32 value (no VMEM round trips).
        w = w_ref[...]                                   # (3, 3*C, C)
        acc = jnp.zeros((rows * W, C), jnp.float32)
        for dy in range(3):
            patch = jnp.concatenate(
                [src[dy:dy + rows, dx:dx + W, :] for dx in range(3)], axis=-1,
            ).reshape(rows * W, 3 * C)
            acc = acc + jnp.dot(patch, w[dy], preferred_element_type=jnp.float32)
        return _silu(acc)                                # (rows*W, C) f32

    # first 3x3 conv: th+2 intermediate rows (image rows r0-1 .. r0+th)
    mid = conv3x3_silu(xpad, th + 2, w1_ref).reshape(th + 2, W, C)

    mpad[...] = jnp.zeros_like(mpad)
    mpad[:, 1:W + 1, :] = mid.astype(mpad.dtype)

    # halo intermediate rows that fall outside the image must act as the second
    # conv's zero padding.
    @pl.when(t == 0)
    def _():
        mpad[0, 1:W + 1, :] = jnp.zeros((W, C), mpad.dtype)

    @pl.when(t == last)
    def _():
        mpad[th + 1, 1:W + 1, :] = jnp.zeros((W, C), mpad.dtype)

    out = conv3x3_silu(mpad, th, w2_ref)
    o_ref[0] = out.reshape(th, W, C).astype(o_ref.dtype)


def bottleneck_3x3x2(x, w1r, w2r, out_dtype):
    """x: (N, H, W, C) bf16 ; w1r/w2r: (3, 3*C, C) bf16 -> (N, H, W, C)."""
    N, H, W, C = x.shape
    act_bytes = jnp.dtype(x.dtype).itemsize
    th = _pick_band_rows(H, W, C, act_bytes)
    est = _bottleneck_vmem_est(th, W, C, act_bytes)
    n_bands = H // th
    return pl.pallas_call(
        _bottleneck_kernel,
        out_shape=jax.ShapeDtypeStruct((N, H, W, C), out_dtype),
        grid=(N, n_bands),
        in_specs=[
            # core band
            pl.BlockSpec((1, th, W, C), lambda b, t: (b, t, 0, 0)),
            # 2-row top/bottom halos (clamped at the image edge, overwritten
            # with zeros in-kernel when out of range)
            pl.BlockSpec((1, 2, W, C),
                         lambda b, t: (b, jnp.maximum(t * th - 2, 0) // 2, 0, 0)),
            pl.BlockSpec((1, 2, W, C),
                         lambda b, t: (b, jnp.minimum(t * th + th, H - 2) // 2, 0, 0)),
            pl.BlockSpec((3, 3 * C, C), lambda b, t: (0, 0, 0)),
            pl.BlockSpec((3, 3 * C, C), lambda b, t: (0, 0, 0)),
        ],
        out_specs=pl.BlockSpec((1, th, W, C), lambda b, t: (b, t, 0, 0)),
        scratch_shapes=[pltpu.VMEM((th + 4, W + 2, C), x.dtype),
                        pltpu.VMEM((th + 2, W + 2, C), x.dtype)],
        compiler_params=pltpu.CompilerParams(
            dimension_semantics=("parallel", "parallel"),
            vmem_limit_bytes=_vmem_limit(est)),
    )(x, x, x, w1r, w2r)


# ----------------------------------------------------------------------------
# cv2 (1x1 conv + SiLU) fused with ECA (pool + channel conv + sigmoid + rescale)
# ----------------------------------------------------------------------------

def _cv2_eca_kernel(*refs, n_parts):
    part_refs = refs[:n_parts]
    w_ref, band_ref, o_ref, psum = refs[n_parts:]

    s = pl.program_id(1)
    ts = part_refs[0].shape[1]
    hw = o_ref.shape[1]

    # channel concat on VMEM tiles (no HBM concat pass); bf16 operands -> MXU
    xcat = jnp.concatenate([p[0] for p in part_refs], axis=-1)
    y = _silu(jnp.dot(xcat, w_ref[...], preferred_element_type=jnp.float32))

    @pl.when(s == 0)
    def _():
        psum[...] = jnp.zeros_like(psum)

    psum[...] += jnp.sum(y, axis=0, keepdims=True)

    off = pl.multiple_of(s * ts, ts)
    o_ref[0, pl.ds(off, ts), :] = y.astype(o_ref.dtype)

    @pl.when(s == pl.num_programs(1) - 1)
    def _():
        # TODO(synk): for large c2 replace the dense (c2,c2) band matmul with a
        # k-tap pltpu.roll weighted sum of the pooled vector.
        pooled = psum[...] * (1.0 / hw)                       # (1, c2)
        att = _sigmoid(jnp.dot(pooled, band_ref[...],
                               preferred_element_type=jnp.float32))
        o_ref[...] = (o_ref[...].astype(jnp.float32)
                      * att.reshape(1, 1, att.shape[-1])).astype(o_ref.dtype)


def cv2_eca_silu(parts, w, band, out_dtype):
    """parts: list of (N, HW, c_i) bf16 ; w: (sum c_i, c2) bf16 ; band: (c2, c2) f32."""
    P = len(parts)
    N, HW = parts[0].shape[0], parts[0].shape[1]
    widths = [int(p.shape[2]) for p in parts]
    ccat, c2 = w.shape
    assert ccat == sum(widths)
    ts = _pick_spatial_tile(HW)
    grid = (N, HW // ts)
    ab = jnp.dtype(out_dtype).itemsize
    est = (2 * ts * ccat * parts[0].dtype.itemsize   # input tiles, double buffered
           + 2 * HW * c2 * ab                        # resident bf16 output block
           + 2 * ccat * c2 * w.dtype.itemsize + c2 * c2 * 4
           + 3 * ts * c2 * 4)                        # f32 temporaries
    in_specs = ([pl.BlockSpec((1, ts, wd), lambda nn, s: (nn, s, 0)) for wd in widths]
                + [pl.BlockSpec((ccat, c2), lambda nn, s: (0, 0)),
                   pl.BlockSpec((c2, c2), lambda nn, s: (0, 0))])
    # TODO(synk): add a second parallel axis (split HW with per-half psum merge)
    # so both v7x TensorCores stay busy at batch=1.
    return pl.pallas_call(
        functools.partial(_cv2_eca_kernel, n_parts=P),
        out_shape=jax.ShapeDtypeStruct((N, HW, c2), out_dtype),
        grid=grid,
        in_specs=in_specs,
        out_specs=pl.BlockSpec((1, HW, c2), lambda nn, s: (nn, 0, 0)),
        scratch_shapes=[pltpu.VMEM((1, c2), jnp.float32)],
        compiler_params=pltpu.CompilerParams(
            dimension_semantics=("parallel", "arbitrary"),
            vmem_limit_bytes=_vmem_limit(est)),
    )(*parts, w, band)


# ----------------------------------------------------------------------------
# C2f_ECA module (parameter setup in plain JAX, hot path in Pallas)
# ----------------------------------------------------------------------------

def eca_kernel_size(c2, gamma=2, b=1):
    t = int(abs((math.log(c2, 2) + b) / gamma))
    k = t if t % 2 else t + 1
    return max(k, 3)


def make_eca_band_matrix(w_1d, C):
    """(C, C) band matrix equivalent to Conv1d(1, 1, k, pad=(k-1)//2, bias=False)."""
    k = w_1d.shape[0]
    pad = (k - 1) // 2
    idx = jnp.arange(C)
    diff = idx[:, None] - idx[None, :] + pad      # band[i, j] = w[i - j + pad]
    mask = (diff >= 0) & (diff < k)
    return jnp.where(mask, w_1d[jnp.clip(diff, 0, k - 1)], 0.0).astype(jnp.float32)


def init_params(key, c1, c2, n=1, e=0.5):
    c = int(c2 * e)
    bn_scale = 1.0 / math.sqrt(1.0 + 1e-5)   # fused BatchNorm (default stats, eps=1e-5)
    ks = jax.random.split(key, 3 + 2 * n)
    params = {
        "cv1_w": jax.random.normal(ks[0], (c1, 2 * c), jnp.float32) * 0.1 * bn_scale,
        "cv2_w": jax.random.normal(ks[1], ((2 + n) * c, c2), jnp.float32) * 0.1 * bn_scale,
        "m": [],
    }
    for i in range(n):
        w1 = jax.random.normal(ks[2 + 2 * i], (3, 3, c, c), jnp.float32) * 0.1 * bn_scale
        w2 = jax.random.normal(ks[3 + 2 * i], (3, 3, c, c), jnp.float32) * 0.1 * bn_scale
        params["m"].append((w1, w2))
    k_eca = eca_kernel_size(c2)
    params["eca_w"] = jax.random.normal(ks[-1], (k_eca,), jnp.float32) * 0.5
    params["eca_band"] = make_eca_band_matrix(params["eca_w"], c2)
    params["_dims"] = (c1, c2, n, c)
    return params


def c2f_eca_forward(x_nchw, params, act_dtype=jnp.bfloat16):
    c1, c2, n, c = params["_dims"]
    # NCHW -> NHWC, cast to bf16 once: MXU-friendly operands + halved HBM traffic.
    x = jnp.transpose(x_nchw, (0, 2, 3, 1)).astype(act_dtype)
    N, H, W, _ = x.shape
    M = N * H * W

    # cv1: one fused (c1, 2c) matmul + SiLU; lane-dense (M, 2c) slab plus the
    # y1 half for the bottleneck chain (no chunk()/slice HBM pass).
    ycat, y1 = cv1_silu(x.reshape(M, c1), params["cv1_w"].astype(act_dtype),
                        c, act_dtype)

    parts = [ycat.reshape(N, H * W, 2 * c)]
    cur = y1.reshape(N, H, W, c)
    for (w1, w2) in params["m"]:
        # Bottleneck (shortcut=False): two 3x3 Conv+SiLU fused, row-band tiled
        w1r = w1.reshape(3, 3 * c, c).astype(act_dtype)
        w2r = w2.reshape(3, 3 * c, c).astype(act_dtype)
        cur = bottleneck_3x3x2(cur, w1r, w2r, act_dtype)
        parts.append(cur.reshape(N, H * W, c))

    # cv2 (1x1 conv + SiLU) fused with ECA attention; concat done inside the kernel
    out = cv2_eca_silu(parts, params["cv2_w"].astype(act_dtype),
                       params["eca_band"], act_dtype)           # (N, HW, c2) bf16
    return jnp.transpose(out.reshape(N, H, W, c2), (0, 3, 1, 2))  # NHWC -> NCHW


# ----------------------------------------------------------------------------
# Pure-JAX reference (for correctness check)
# ----------------------------------------------------------------------------

def ref_forward(x_nchw, params):
    c1, c2, n, c = params["_dims"]
    x = jnp.transpose(x_nchw, (0, 2, 3, 1)).astype(jnp.float32)
    silu = lambda v: v * jax.nn.sigmoid(v)

    t = silu(jnp.einsum("nhwc,cd->nhwd", x, params["cv1_w"]))
    y0, y1 = t[..., :c], t[..., c:]
    ys = [y0, y1]
    cur = y1

    def conv3(v, w):
        o = jax.lax.conv_general_dilated(
            v, w, (1, 1), "SAME", dimension_numbers=("NHWC", "HWIO", "NHWC"))
        return silu(o)

    for (w1, w2) in params["m"]:
        cur = conv3(conv3(cur, w1), w2)
        ys.append(cur)
    out = silu(jnp.einsum("nhwc,cd->nhwd", jnp.concatenate(ys, -1), params["cv2_w"]))

    # ECA: global average pool + 1D conv over channels + sigmoid + rescale
    pooled = jnp.mean(out, axis=(1, 2))                       # (N, c2)
    w_eca = params["eca_w"]
    k = w_eca.shape[0]
    pad = (k - 1) // 2
    pooled_pad = jnp.pad(pooled, ((0, 0), (pad, pad)))
    att_pre = sum(w_eca[t_] * pooled_pad[:, t_:t_ + c2] for t_ in range(k))
    att = jax.nn.sigmoid(att_pre)
    out = out * att[:, None, None, :]
    return jnp.transpose(out, (0, 3, 1, 2))


# ----------------------------------------------------------------------------

if __name__ == "__main__":
    key = jax.random.PRNGKey(0)
    k_x, k_p = jax.random.split(key)

    c1, c2, n = 4, 8, 1
    x = jax.random.normal(k_x, (2, c1, 16, 16), jnp.float32)   # NCHW like PyTorch
    params = init_params(k_p, c1, c2, n=n, e=0.5)

    out = jax.block_until_ready(c2f_eca_forward(x, params))
    ref = jax.block_until_ready(ref_forward(x, params))

    # bf16 intermediates -> loose-ish tolerance
    np.testing.assert_allclose(np.asarray(out.astype(jnp.float32)),
                               np.asarray(ref), rtol=2e-2, atol=2e-2)
    assert out.shape == (2, c2, 16, 16)
    print("KERNEL_OK")
</pallas_src>

<mosaic_0001>
module attributes {stable_mosaic.version = 11 : i64} {
  func.func @_cv1_kernel(%arg0: i32, %arg1: memref<512x4xbf16, #tpu.memory_space<vmem>>, %arg2: memref<4x8xbf16, #tpu.memory_space<vmem>>, %arg3: memref<512x8xbf16, #tpu.memory_space<vmem>>, %arg4: memref<512x4xbf16, #tpu.memory_space<vmem>>) attributes {dimension_semantics = [#tpu.dimension_semantics<parallel>], iteration_bounds = array<i64: 1>, scalar_prefetch = 0 : i64, scratch_operands = 0 : i64, tpu.core_type = #tpu.core_type<tc>, window_params = [{transform_indices = @transform_0, window_bounds = array<i64: 512, 4>}, {pipeline_mode = #tpu.pipeline_mode<synchronous>, transform_indices = @transform_1, window_bounds = array<i64: 4, 8>}, {transform_indices = @transform_2, window_bounds = array<i64: 512, 8>}, {transform_indices = @transform_3, window_bounds = array<i64: 512, 4>}]} {
    %c0 = arith.constant 0 : index
    %c0_0 = arith.constant 0 : index
    %0 = vector.load %arg1[%c0, %c0_0] : memref<512x4xbf16, #tpu.memory_space<vmem>>, vector<512x4xbf16>
    %c0_1 = arith.constant 0 : index
    %c0_2 = arith.constant 0 : index
    %1 = vector.load %arg2[%c0_1, %c0_2] : memref<4x8xbf16, #tpu.memory_space<vmem>>, vector<4x8xbf16>
    %cst = arith.constant dense<0.000000e+00> : vector<512x8xf32>
    %2 = tpu.matmul %0, %1, %cst {dimension_numbers = #tpu.dot_dimension_numbers<[1], [0], [0], [1], [0, 0, 1, 1], [], []>} : vector<512x4xbf16>, vector<4x8xbf16>, vector<512x8xf32> -> vector<512x8xf32>
    %cst_3 = arith.constant 5.000000e-01 : f32
    %3 = vector.broadcast %cst_3 : f32 to vector<512x8xf32>
    %4 = arith.mulf %3, %2 : vector<512x8xf32>
    %5 = math.tanh %4 : vector<512x8xf32>
    %cst_4 = arith.constant 5.000000e-01 : f32
    %6 = vector.broadcast %cst_4 : f32 to vector<512x8xf32>
    %7 = arith.mulf %6, %5 : vector<512x8xf32>
    %cst_5 = arith.constant 5.000000e-01 : f32
    %8 = vector.broadcast %cst_5 : f32 to vector<512x8xf32>
    %9 = arith.addf %7, %8 : vector<512x8xf32>
    %10 = arith.mulf %2, %9 : vector<512x8xf32>
    %11 = arith.truncf %10 : vector<512x8xf32> to vector<512x8xbf16>
    %c0_6 = arith.constant 0 : index
    %c0_7 = arith.constant 0 : index
    %12 = vector.load %arg3[%c0_6, %c0_7] : memref<512x8xbf16, #tpu.memory_space<vmem>>, vector<512x8xbf16>
    tpu.vector_store %arg3[%c0_6, %c0_7], %11 {strides = array<i32>} : memref<512x8xbf16, #tpu.memory_space<vmem>>, vector<512x8xbf16>,
    %13 = vector.extract_strided_slice %10 {offsets = [0, 4], sizes = [512, 4], strides = [1, 1]} : vector<512x8xf32> to vector<512x4xf32>
    %14 = arith.truncf %13 : vector<512x4xf32> to vector<512x4xbf16>
    %c0_8 = arith.constant 0 : index
    %c0_9 = arith.constant 0 : index
    %15 = vector.load %arg4[%c0_8, %c0_9] : memref<512x4xbf16, #tpu.memory_space<vmem>>, vector<512x4xbf16>
    tpu.vector_store %arg4[%c0_8, %c0_9], %14 {strides = array<i32>} : memref<512x4xbf16, #tpu.memory_space<vmem>>, vector<512x4xbf16>,
    return
  }
  func.func @transform_0(%arg0: i32) -> (i32, i32) {
    %c0_i32 = arith.constant 0 : i32
    %c0_i32_0 = arith.constant 0 : i32
    return %arg0, %c0_i32 : i32, i32
  }
  func.func @transform_1(%arg0: i32) -> (i32, i32) {
    %c0_i32 = arith.constant 0 : i32
    %c0_i32_0 = arith.constant 0 : i32
    %c0_i32_1 = arith.constant 0 : i32
    return %c0_i32, %c0_i32_0 : i32, i32
  }
  func.func @transform_2(%arg0: i32) -> (i32, i32) {
    %c0_i32 = arith.constant 0 : i32
    %c0_i32_0 = arith.constant 0 : i32
    return %arg0, %c0_i32 : i32, i32
  }
  func.func @transform_3(%arg0: i32) -> (i32, i32) {
    %c0_i32 = arith.constant 0 : i32
    %c0_i32_0 = arith.constant 0 : i32
    return %arg0, %c0_i32 : i32, i32
  }
}

</mosaic_0001>

<bundles_post_ra>
// kernel: tpu_custom_call.1
= control target key start
LH: loop header
LB: loop body
LE: loop exit
PB: predicated region body
PF: predicated region fallthrough
CT: control target
= control target key end

     0   :  { %vm336_vm0 = vcmask 1041408   ;;  %vm239_vm1 = vcmask 31744   ;;  %vm1205_vm2 = vcmask 60416   ;;  %s1991_s20 = smov 124   ;;  %vm1462_vm3 = vcmask 27648   ;;  %s3233_s1 = inlined_call_operand.vmem [shape: bf16[4,8], index: 1, kind: input, shape index: {}]   ;;  %s3234_s0 = inlined_call_operand.vmem [shape: bf16[512,4], index: 0, kind: input, shape index: {}]   ;;  %s3235_s2 = inlined_call_operand.vmem [shape: bf16[512,8], index: 2, kind: output, shape index: {0}]   ;;  %s3236_s3 = inlined_call_operand.vmem [shape: bf16[512,4], index: 3, kind: output, shape index: {1}]  }
   0x1   :  { %v78_v0 = vld [vmem:[%s3233_s1] sm:$0x3]  ;;  %v1833_v4 = vld [vmem:[%s3234_s0 + $0x8] sm:$0xff]   ;;  %v1835_v6 = vld [vmem:[%s3234_s0 + $0x10] sm:$0xff]  }
   0x2   :  { %1828 = vmatprep.subr.msk.bf16.mxu0 %vm336_vm0, %v78_v0  ;;  %1829 = vmatprep.subr.msk.bf16.mxu1 %vm336_vm0, %v78_v0  ;;  %v338_v1 = vsel %vm336_vm0, %v78_v0, 0  ;;  %v1831_v2 = vld [vmem:[%s3234_s0] sm:$0xff]   ;;  %v1834_v5 = vld [vmem:[%s3234_s0 + $0x88] sm:$0xff]   ;;  %v1836_v7 = vld [vmem:[%s3234_s0 + $0x90] sm:$0xff]  }
   0x3   :  { %1761 = vmatpush3.bf16.msra.mxu0 %v338_v1  ;;  %1827 = vmatpush3.bf16.msra.mxu1 %v338_v1  ;;  %v1832_v3 = vld [vmem:[%s3234_s0 + $0x80] sm:$0xff]   ;;  %v1837_v8 = vld [vmem:[%s3234_s0 + $0x18] sm:$0xff]   ;;  %v1841_v12 = vld [vmem:[%s3234_s0 + $0x28] sm:$0xff]  }
   0x4   :  { %1762 = vmatprep.mubr.msk.bf16.mxu0 %vm239_vm1, %v1831_v2  ;;  %1794 = vmatprep.mubr.msk.bf16.mxu1 %vm239_vm1, %v1832_v3  ;;  %v1838_v9 = vld [vmem:[%s3234_s0 + $0x98] sm:$0xff]   ;;  %v1839_v10 = vld [vmem:[%s3234_s0 + $0x20] sm:$0xff]   ;;  %v1842_v13 = vld [vmem:[%s3234_s0 + $0xa8] sm:$0xff]  }
   0x5   :  { %v1840_v11 = vld [vmem:[%s3234_s0 + $0xa0] sm:$0xff]   ;;  %v1843_v14 = vld [vmem:[%s3234_s0 + $0x30] sm:$0xff]   ;;  %v1844_v16 = vld [vmem:[%s3234_s0 + $0x38] sm:$0xff]  }
   0x6   :  { %1763 = vmatmul.mubr.msk.bf16.vlgmr.msra.gmra.mrb[0].mxu0 %vm239_vm1, %v1833_v4  ;;  %1795 = vmatmul.mubr.msk.bf16.vlgmr.msra.gmra.mrb[0].mxu1 %vm239_vm1, %v1834_v5  ;;  %v1845_v15 = vld [vmem:[%s3234_s0 + $0xb0] sm:$0xff]   ;;  %v1846_v17 = vld [vmem:[%s3234_s0 + $0xb8] sm:$0xff]   ;;  %v1847_v18 = vld [vmem:[%s3234_s0 + $0x40] sm:$0xff]  }
   0x7   :  { %1766 = vmatprep.mubr.msk.bf16.mxu0 %vm239_vm1, %v1835_v6  ;;  %1798 = vmatprep.mubr.msk.bf16.mxu1 %vm239_vm1, %v1836_v7  ;;  %v1849_v19 = vld [vmem:[%s3234_s0 + $0xc0] sm:$0xff]   ;;  %v1848_v20 = vld [vmem:[%s3234_s0 + $0x48] sm:$0xff]   ;;  %v1851_v22 = vld [vmem:[%s3234_s0 + $0x50] sm:$0xff]  }
   0x8   :  { %v1850_v21 = vld [vmem:[%s3234_s0 + $0xc8] sm:$0xff]   ;;  %v1853_v23 = vld [vmem:[%s3234_s0 + $0xd0] sm:$0xff]   ;;  %v1852_v24 = vld [vmem:[%s3234_s0 + $0x58] sm:$0xff]  }
   0x9   :  { %v1854_v25 = vld [vmem:[%s3234_s0 + $0xd8] sm:$0xff]   ;;  %v1855_v26 = vld [vmem:[%s3234_s0 + $0x60] sm:$0xff]   ;;  %v1856_v28 = vld [vmem:[%s3234_s0 + $0x68] sm:$0xff]  }
   0xa   :  { %v1857_v27 = vld [vmem:[%s3234_s0 + $0xe0] sm:$0xff]   ;;  %v1858_v29 = vld [vmem:[%s3234_s0 + $0xe8] sm:$0xff]   ;;  %v1859_v30 = vld [vmem:[%s3234_s0 + $0x70] sm:$0xff]  }
   0xb   :  { %v1861_v31 = vld [vmem:[%s3234_s0 + $0xf0] sm:$0xff]   ;;  %v1860_v32 = vld [vmem:[%s3234_s0 + $0x78] sm:$0xff]  }
   0xc   :  { %v1862_v33 = vld [vmem:[%s3234_s0 + $0xf8] sm:$0xff]  }
   0xe   :  { %1767 = vmatmul.mubr.msk.bf16.gmra.mrb[4].mxu0 %vm239_vm1, %v1837_v8  ;;  %1799 = vmatmul.mubr.msk.bf16.gmra.mrb[4].mxu1 %vm239_vm1, %v1838_v9 }
   0xf   :  { %1770 = vmatprep.mubr.msk.bf16.mxu0 %vm239_vm1, %v1839_v10  ;;  %1802 = vmatprep.mubr.msk.bf16.mxu1 %vm239_vm1, %v1840_v11 }
  0x16   :  { %1771 = vmatmul.mubr.msk.bf16.gmra.mrb[8].mxu0 %vm239_vm1, %v1841_v12  ;;  %1803 = vmatmul.mubr.msk.bf16.gmra.mrb[8].mxu1 %vm239_vm1, %v1842_v13 }
  0x17   :  { %1774 = vmatprep.mubr.msk.bf16.mxu0 %vm239_vm1, %v1843_v14  ;;  %1806 = vmatprep.mubr.msk.bf16.mxu1 %vm239_vm1, %v1845_v15 }
  0x1e   :  { %1775 = vmatmul.mubr.msk.bf16.gmra.mrb[12].mxu0 %vm239_vm1, %v1844_v16  ;;  %1807 = vmatmul.mubr.msk.bf16.gmra.mrb[12].mxu1 %vm239_vm1, %v1846_v17 }
  0x1f   :  { %1778 = vmatprep.mubr.msk.bf16.mxu0 %vm239_vm1, %v1847_v18  ;;  %1810 = vmatprep.mubr.msk.bf16.mxu1 %vm239_vm1, %v1849_v19 }
  0x26   :  { %1779 = vmatmul.mubr.msk.bf16.gmra.mrb[16].mxu0 %vm239_vm1, %v1848_v20  ;;  %1811 = vmatmul.mubr.msk.bf16.gmra.mrb[16].mxu1 %vm239_vm1, %v1850_v21 }
  0x27   :  { %1782 = vmatprep.mubr.msk.bf16.mxu0 %vm239_vm1, %v1851_v22  ;;  %1814 = vmatprep.mubr.msk.bf16.mxu1 %vm239_vm1, %v1853_v23 }
  0x2e   :  { %1783 = vmatmul.mubr.msk.bf16.gmra.mrb[20].mxu0 %vm239_vm1, %v1852_v24  ;;  %1815 = vmatmul.mubr.msk.bf16.gmra.mrb[20].mxu1 %vm239_vm1, %v1854_v25 }
  0x2f   :  { %1786 = vmatprep.mubr.msk.bf16.mxu0 %vm239_vm1, %v1855_v26  ;;  %1818 = vmatprep.mubr.msk.bf16.mxu1 %vm239_vm1, %v1857_v27 }
  0x36   :  { %1787 = vmatmul.mubr.msk.bf16.gmra.mrb[24].mxu0 %vm239_vm1, %v1856_v28  ;;  %1819 = vmatmul.mubr.msk.bf16.gmra.mrb[24].mxu1 %vm239_vm1, %v1858_v29 }
  0x37   :  { %1790 = vmatprep.mubr.msk.bf16.mxu0 %vm239_vm1, %v1859_v30  ;;  %1822 = vmatprep.mubr.msk.bf16.mxu1 %vm239_vm1, %v1861_v31 }
  0x3e   :  { %1791 = vmatmul.mubr.msk.bf16.gmra.mrb[28].mxu0 %vm239_vm1, %v1860_v32  ;;  %1823 = vmatmul.mubr.msk.bf16.gmra.mrb[28].mxu1 %vm239_vm1, %v1862_v33 }
  0xd9   :  { %v2143_v34 = vpop.f32.mrb[0].mxu0  ;;  %v2146_v36 = vpop.f32.mrb[0].mxu1 }
  0xda   :  { %v631_v35 = vmul.f32 0.5, %v2143_v34  ;;  %v2148_v37 = vpop.f32.mrb[1].mxu0  ;;  %v663_v38 = vmul.f32 0.5, %v2146_v36  ;;  %v2152_v40 = vpop.f32.mrb[1].mxu1 }
  0xdb   :  { %v629_v39 = vmul.f32 0.5, %v2148_v37  ;;  %v2154_v41 = vpop.f32.mrb[2].mxu0  ;;  %v661_v42 = vmul.f32 0.5, %v2152_v40  ;;  %v2158_v44 = vpop.f32.mrb[2].mxu1 }
  0xdc   :  { %1863 = vtanh.f32 %v631_v35  ;;  %v632_v43 = vmul.f32 0.5, %v2154_v41  ;;  %v2160_v45 = vpop.f32.mrb[3].mxu0  ;;  %v664_v46 = vmul.f32 0.5, %v2158_v44  ;;  %v2163_v47 = vpop.f32.mrb[3].mxu1 }
  0xdd   :  { %1865 = vtanh.f32 %v663_v38  ;;  %v630_v48 = vmul.f32 0.5, %v2160_v45  ;;  %v662_v49 = vmul.f32 0.5, %v2163_v47 }
  0xde   :  { %1867 = vtanh.f32 %v629_v39 }
  0xdf   :  { %1869 = vtanh.f32 %v661_v42 }
  0xe0   :  { %1871 = vtanh.f32 %v632_v43 }
  0xe1   :  { %1873 = vtanh.f32 %v664_v46  ;;  %v2167_v50 = vpop.f32.mrb[4].mxu0  ;;  %v2170_v52 = vpop.f32.mrb[4].mxu1 }
  0xe2   :  { %1875 = vtanh.f32 %v630_v48  ;;  %v635_v51 = vmul.f32 0.5, %v2167_v50  ;;  %v2172_v53 = vpop.f32.mrb[5].mxu0  ;;  %v667_v54 = vmul.f32 0.5, %v2170_v52  ;;  %v2176_v56 = vpop.f32.mrb[5].mxu1 }
  0xe3   :  { %1877 = vtanh.f32 %v662_v49  ;;  %v633_v55 = vmul.f32 0.5, %v2172_v53  ;;  %v2178_v57 = vpop.f32.mrb[6].mxu0  ;;  %v665_v58 = vmul.f32 0.5, %v2176_v56  ;;  %v2182_v60 = vpop.f32.mrb[6].mxu1 }
  0xe4   :  { %1879 = vtanh.f32 %v635_v51  ;;  %v636_v59 = vmul.f32 0.5, %v2178_v57  ;;  %v2184_v61 = vpop.f32.mrb[7].mxu0  ;;  %v668_v62 = vmul.f32 0.5, %v2182_v60  ;;  %v2187_v63 = vpop.f32.mrb[7].mxu1 }
  0xe5   :  { %1881 = vtanh.f32 %v667_v54  ;;  %v634_v1 = vmul.f32 0.5, %v2184_v61  ;;  %v666_v4 = vmul.f32 0.5, %v2187_v63 }
  0xe6   :  { %v1864_v0 = vpop.eup %1863  ;;  %1883 = vtanh.f32 %v633_v55 }
  0xe7   :  { %v1866_v2 = vpop.eup %1865  ;;  %v759_v3 = vmul.f32 0.5, %v1864_v0  ;;  %1885 = vtanh.f32 %v665_v58 }
  0xe8   :  { %v1868_v5 = vpop.eup %1867  ;;  %v791_v6 = vmul.f32 0.5, %v1866_v2  ;;  %1887 = vtanh.f32 %v636_v59 }
  0xe9   :  { %v1870_v7 = vpop.eup %1869  ;;  %v823_v8 = vadd.f32 0.5, %v759_v3  ;;  %v757_v9 = vmul.f32 0.5, %v1868_v5  ;;  %1889 = vtanh.f32 %v668_v62  ;;  %v2191_v10 = vpop.f32.mrb[8].mxu0 }
  0xea   :  { %v1872_v11 = vpop.eup %1871  ;;  %v855_v12 = vadd.f32 0.5, %v791_v6  ;;  %v789_v13 = vmul.f32 0.5, %v1870_v7  ;;  %1891 = vtanh.f32 %v634_v1  ;;  %v639_v14 = vmul.f32 0.5, %v2191_v10  ;;  %v2194_v15 = vpop.f32.mrb[8].mxu1 }
  0xeb   :  { %v2196_v16 = vpop.f32.mrb[9].mxu0  ;;  %v1874_v17 = vpop.eup %1873  ;;  %v2199_v18 = vmul.f32 %v2143_v34, %v823_v8  ;;  %v821_v19 = vadd.f32 0.5, %v757_v9  ;;  %v760_v20 = vmul.f32 0.5, %v1872_v11  ;;  %1893 = vtanh.f32 %v666_v4 }
  0xec   :  { %v2201_v21 = vpop.f32.mrb[9].mxu1  ;;  %v2203_v22 = vpop.f32.mrb[10].mxu0  ;;  %v2206_v24 = vmul.f32 %v2146_v36, %v855_v12  ;;  %v853_v25 = vadd.f32 0.5, %v789_v13  ;;  %v792_v26 = vmul.f32 0.5, %v1874_v17  ;;  %1895 = vtanh.f32 %v639_v14 }
  0xed   :  { %v1876_v23 = vpop.eup %1875  ;;  %v2208_v27 = vpop.f32.mrb[10].mxu1  ;;  %v885_v30 = vmul.f32 %v821_v19, %v2148_v37  ;;  %v824_v31 = vadd.f32 0.5, %v760_v20  ;;  %v2214_v33 = vmul.f32 0.5, %v2194_v15  ;;  %v2220_v42 = vmul.f32 0.5, %v2196_v16 }
  0xee   :  { %v2210_v28 = vpop.f32.mrb[11].mxu0  ;;  %v1878_v29 = vpop.eup %1877  ;;  %v758_v32 = vmul.f32 0.5, %v1876_v23  ;;  %v917_v36 = vmul.f32 %v853_v25, %v2152_v40  ;;  %v856_v38 = vadd.f32 0.5, %v792_v26 }
  0xef   :  { %v2216_v34 = vpop.f32.mrb[11].mxu1  ;;  %v1880_v35 = vpop.eup %1879  ;;  %v790_v39 = vmul.f32 0.5, %v1878_v29  ;;  %v2222_v46 = vpack.c.bf16 %v885_v30, %v885_v30  ;;  %v888_v37 = vmul.f32 %v2154_v41, %v824_v31  ;;  %1897 = vtanh.f32 %v2214_v33 }
  0xf0   :  { %v1882_v43 = vpop.eup %1881  ;;  %v822_v48 = vadd.f32 0.5, %v758_v32  ;;  %v763_v49 = vmul.f32 0.5, %v1880_v35  ;;  %v2225_v54 = vpack.c.bf16 %v917_v36, %v917_v36  ;;  %v920_v55 = vmul.f32 %v2158_v44, %v856_v38 }
  0xf1   :  { %v1884_v51 = vpop.eup %1883  ;;  %v854_v58 = vadd.f32 0.5, %v790_v39  ;;  %v795_v59 = vmul.f32 0.5, %v1882_v43  ;;  %1206 = vst.msk [vmem:[%s3235_s2] sm:$0xf] %vm1205_vm2, %v2222_v46  ;;  %v2233_v62 = vpack.c.bf16 %v888_v37, %v888_v37  ;;  %v2236_v2 = vpop.f32.mrb[12].mxu0  ;;  %1899 = vtanh.f32 %v2220_v42 }
  0xf2   :  { %v1886_v40 = vpop.eup %1885  ;;  %v886_v41 = vmul.f32 %v822_v48, %v2160_v45  ;;  %v827_v0 = vadd.f32 0.5, %v763_v49  ;;  %v761_v1 = vmul.f32 0.5, %v1884_v51  ;;  %1238 = vst.msk [vmem:[%s3235_s2 + $0x80] sm:$0xf] %vm1205_vm2, %v2225_v54  ;;  %v2243_v44 = vpack.c.bf16 %v920_v55, %v920_v55  ;;  %v2246_v7 = vpop.f32.mrb[13].mxu0 }
  0xf3   :  { %v1888_v3 = vpop.eup %1887  ;;  %v918_v4 = vmul.f32 %v854_v58, %v2163_v47  ;;  %v859_v5 = vadd.f32 0.5, %v795_v59  ;;  %v793_v6 = vmul.f32 0.5, %v1886_v40  ;;  %v2248_v45 = vpop.f32.mrb[12].mxu1  ;;  %1209 = vst.msk [vmem:[%s3235_s2 + $0xc] sm:$0xf] %vm1205_vm2, %v2233_v62 }
  0xf4   :  { %v1890_v8 = vpop.eup %1889  ;;  %v2255_v9 = vpack.c.bf16 %v886_v41, %v886_v41  ;;  %v891_v11 = vmul.f32 %v2167_v50, %v827_v0  ;;  %v825_v12 = vadd.f32 0.5, %v761_v1  ;;  %v764_v13 = vmul.f32 0.5, %v1888_v3  ;;  %v2258_v47 = vpop.f32.mrb[14].mxu0  ;;  %1241 = vst.msk [vmem:[%s3235_s2 + $0x8c] sm:$0xf] %vm1205_vm2, %v2243_v44 }
  0xf5   :  { %v2260_v14 = vpop.f32.mrb[13].mxu1  ;;  %v1892_v17 = vpop.eup %1891  ;;  %v2267_v19 = vpack.c.bf16 %v918_v4, %v918_v4  ;;  %v923_v20 = vmul.f32 %v2170_v52, %v859_v5  ;;  %v857_v23 = vadd.f32 0.5, %v793_v6  ;;  %v796_v25 = vmul.f32 0.5, %v1890_v8 }
  0xf6   :  { %v2270_v50 = vpop.f32.mrb[15].mxu0  ;;  %v2272_v26 = vpop.f32.mrb[14].mxu1  ;;  %1207 = vst.msk [vmem:[%s3235_s2 + $0x4] sm:$0xf] %vm1205_vm2, %v2255_v9  ;;  %v2279_v30 = vpack.c.bf16 %v891_v11, %v891_v11  ;;  %v889_v31 = vmul.f32 %v825_v12, %v2172_v53  ;;  %v828_v32 = vadd.f32 0.5, %v764_v13  ;;  %v762_v35 = vmul.f32 0.5, %v1892_v17 }
  0xf7   :  { %v1894_v29 = vpop.eup %1893  ;;  %v2282_v52 = vpop.f32.mrb[15].mxu1  ;;  %1239 = vst.msk [vmem:[%s3235_s2 + $0x84] sm:$0xf] %vm1205_vm2, %v2267_v19  ;;  %v2289_v38 = vpack.c.bf16 %v923_v20, %v923_v20  ;;  %v921_v39 = vmul.f32 %v857_v23, %v2176_v56  ;;  %v860_v43 = vadd.f32 0.5, %v796_v25  ;;  %v669_v0 = vmul.f32 0.5, %v2201_v21 }
  0xf8   :  { %v1896_v36 = vpop.eup %1895  ;;  %v794_v37 = vmul.f32 0.5, %v1894_v29  ;;  %1212 = vst.msk [vmem:[%s3235_s2 + $0x18] sm:$0xf] %vm1205_vm2, %v2279_v30  ;;  %v2297_v53 = vpack.c.bf16 %v889_v31, %v889_v31  ;;  %v892_v48 = vmul.f32 %v2178_v57, %v828_v32  ;;  %v826_v49 = vadd.f32 0.5, %v762_v35 }
  0xf9   :  { %v767_v51 = vmul.f32 0.5, %v1896_v36  ;;  %1244 = vst.msk [vmem:[%s3235_s2 + $0x98] sm:$0xf] %vm1205_vm2, %v2289_v38  ;;  %v2305_v56 = vpack.c.bf16 %v921_v39, %v921_v39  ;;  %v924_v55 = vmul.f32 %v2182_v60, %v860_v43  ;;  %v2318_v41 = vpop.f32.mrb[16].mxu0  ;;  %v640_v1 = vmul.f32 0.5, %v2203_v22  ;;  %v2332_v3 = vpop.f32.mrb[16].mxu1 }
  0xfa   :  { %v858_v58 = vadd.f32 0.5, %v794_v37  ;;  %1210 = vst.msk [vmem:[%s3235_s2 + $0x10] sm:$0xf] %vm1205_vm2, %v2297_v53  ;;  %v2314_v57 = vpack.c.bf16 %v892_v48, %v892_v48  ;;  %v890_v59 = vmul.f32 %v826_v49, %v2184_v61  ;;  %v2330_v61 = vpop.f32.mrb[17].mxu0  ;;  %3246 = vst [vmem:[#allocation2_spill] sm:$0xff] %v2332_v3  ;;  %v638_v5 = vmul.f32 0.5, %v2210_v28  ;;  %v1898_v36 = vpop.eup %1897 }
  0xfb   :  { %v831_v40 = vadd.f32 0.5, %v767_v51  ;;  %1242 = vst.msk [vmem:[%s3235_s2 + $0x90] sm:$0xf] %vm1205_vm2, %v2305_v56  ;;  %v2325_v60 = vpack.c.bf16 %v924_v55, %v924_v55  ;;  %v2344_v6 = vpop.f32.mrb[18].mxu0  ;;  %v2346_v8 = vpop.f32.mrb[17].mxu1  ;;  %1901 = vtanh.f32 %v669_v0  ;;  %v670_v12 = vmul.f32 0.5, %v2216_v34 }
  0xfc   :  { %v922_v33 = vmul.f32 %v858_v58, %v2187_v63  ;;  %1213 = vst.msk [vmem:[%s3235_s2 + $0x1c] sm:$0xf] %vm1205_vm2, %v2314_v57  ;;  %v2339_v42 = vpack.c.bf16 %v890_v59, %v890_v59  ;;  %v672_v63 = vmul.f32 0.5, %v2208_v27  ;;  %3247 = vst [vmem:[#allocation3_spill] sm:$0xff] %v2346_v8  ;;  %v2358_v13 = vpop.f32.mrb[19].mxu0  ;;  %v2360_v17 = vpop.f32.mrb[18].mxu1  ;;  %1903 = vtanh.f32 %v640_v1 }
  0xfd   :  { %v895_v4 = vmul.f32 %v2191_v10, %v831_v40  ;;  %1245 = vst.msk [vmem:[%s3235_s2 + $0x9c] sm:$0xf] %vm1205_vm2, %v2325_v60  ;;  %v1697_v10 = vpack.c.bf16 %v2206_v24, %v2206_v24  ;;  %3248 = vst [vmem:[#allocation4_spill] sm:$0xff] %v2360_v17  ;;  %v1665_v23 = vpack.c.bf16 %v2199_v18, %v2199_v18  ;;  %v643_v25 = vmul.f32 0.5, %v2236_v2  ;;  %v2372_v29 = vpop.f32.mrb[19].mxu1  ;;  %v1900_v51 = vpop.eup %1899 }
  0xfe   :  { %v2353_v11 = vpack.c.bf16 %v922_v33, %v922_v33  ;;  %1211 = vst.msk [vmem:[%s3235_s2 + $0x14] sm:$0xf] %vm1205_vm2, %v2339_v42  ;;  %3249 = vst [vmem:[#allocation5_spill] sm:$0xff] %v2372_v29  ;;  %1905 = vtanh.f32 %v672_v63  ;;  %v641_v18 = vmul.f32 0.5, %v2246_v7  ;;  %v644_v24 = vmul.f32 0.5, %v2258_v47 }
  0xff   :  { %v2367_v20 = vpack.c.bf16 %v895_v4, %v895_v4  ;;  %1338 = vrot.lane.b32.xlu0 %v1697_v10, %s1991_s20  ;;  %1240 = vst.msk [vmem:[%s3235_s2 + $0x88] sm:$0xf] %vm1205_vm2, %v1697_v10  ;;  %1907 = vtanh.f32 %v638_v5  ;;  %1274 = vrot.lane.b32.xlu1 %v1665_v23, %s1991_s20  ;;  %1208 = vst.msk [vmem:[%s3235_s2 + $0x8] sm:$0xf] %vm1205_vm2, %v1665_v23  ;;  %v642_v31 = vmul.f32 0.5, %v2270_v50  ;;  %v675_v32 = vmul.f32 0.5, %v2248_v45 }
 0x100   :  { %1243 = vst.msk [vmem:[%s3235_s2 + $0x94] sm:$0xf] %vm1205_vm2, %v2353_v11  ;;  %1909 = vtanh.f32 %v670_v12  ;;  %v673_v39 = vmul.f32 0.5, %v2260_v14  ;;  %v676_v43 = vmul.f32 0.5, %v2272_v26  ;;  %v674_v37 = vmul.f32 0.5, %v2282_v52 }
 0x101   :  { %1216 = vst.msk [vmem:[%s3235_s2 + $0x28] sm:$0xf] %vm1205_vm2, %v2367_v20  ;;  %1911 = vtanh.f32 %v643_v25  ;;  %v2398_v35 = vpop.f32.mrb[20].mxu0  ;;  %v2407_v49 = vpop.f32.mrb[20].mxu1  ;;  %v799_v55 = vmul.f32 0.5, %v1898_v36  ;;  %v647_v58 = vmul.f32 0.5, %v2318_v41 }
 0x102   :  { %3250 = vst [vmem:[#allocation6_spill] sm:$0xff] %v2398_v35  ;;  %1913 = vtanh.f32 %v641_v18  ;;  %v2405_v48 = vpop.f32.mrb[21].mxu0  ;;  %v2415_v40 = vpop.f32.mrb[21].mxu1  ;;  %v765_v33 = vmul.f32 0.5, %v1900_v51  ;;  %v648_v0 = vmul.f32 0.5, %v2344_v6  ;;  %v646_v1 = vmul.f32 0.5, %v2358_v13 }
 0x103   :  { %1270 = vrot.lane.b32.xlu0 %v2222_v46, %s1991_s20  ;;  %3251 = vst [vmem:[#allocation7_spill] sm:$0xff] %v2405_v48  ;;  %1276 = vrot.lane.b32.xlu1 %v2233_v62, %s1991_s20  ;;  %1915 = vtanh.f32 %v644_v24  ;;  %v645_v46 = vmul.f32 0.5, %v2330_v61  ;;  %v2413_v59 = vpop.f32.mrb[22].mxu0  ;;  %v2421_v63 = vpop.f32.mrb[22].mxu1  ;;  %v863_v62 = vadd.f32 0.5, %v799_v55  ;;  %v2424_v5 = vmul.f32 0.5, %v2332_v3 }
 0x104   :  { %1917 = vtanh.f32 %v642_v31  ;;  %v2419_v4 = vpop.f32.mrb[23].mxu0  ;;  %v2427_v12 = vmul.f32 0.5, %v2346_v8  ;;  %v2429_v10 = vpop.f32.mrb[23].mxu1  ;;  %v829_v25 = vadd.f32 0.5, %v765_v33  ;;  %v2434_v18 = vmul.f32 0.5, %v2360_v17 }
 0x105   :  { %1919 = vtanh.f32 %v675_v32  ;;  %v1902_v23 = vpop.eup %1901  ;;  %v2437_v24 = vmul.f32 0.5, %v2372_v29  ;;  %v927_v32 = vmul.f32 %v2194_v15, %v863_v62  ;;  %v2443_v51 = vmul.f32 0.5, %v2398_v35 }
 0x106   :  { %1921 = vtanh.f32 %v673_v39  ;;  %v1904_v31 = vpop.eup %1903  ;;  %v797_v36 = vmul.f32 0.5, %v1902_v23  ;;  %v2447_v33 = vmul.f32 0.5, %v2405_v48 }
 0x107   :  { %1334 = vrot.lane.b32.xlu0 %v2225_v54, %s1991_s20  ;;  %1340 = vrot.lane.b32.xlu1 %v2243_v44, %s1991_s20  ;;  %1923 = vtanh.f32 %v676_v43  ;;  %v893_v54 = vmul.f32 %v829_v25, %v2196_v16  ;;  %v768_v39 = vmul.f32 0.5, %v1904_v31  ;;  %v2449_v17 = vpack.c.bf16 %v927_v32, %v927_v32 }
 0x108   :  { %v1906_v55 = vpop.eup %1905  ;;  %1925 = vtanh.f32 %v674_v37  ;;  %v861_v15 = vadd.f32 0.5, %v797_v36 }
 0x109   :  { %v1908_v29 = vpop.eup %1907  ;;  %v800_v62 = vmul.f32 0.5, %v1906_v55  ;;  %1927 = vtanh.f32 %v647_v58  ;;  %v2451_v23 = vpop.f32.mrb[24].mxu0  ;;  %v2453_v43 = vpack.c.bf16 %v893_v54, %v893_v54  ;;  %v832_v35 = vadd.f32 0.5, %v768_v39  ;;  %1248 = vst.msk [vmem:[%s3235_s2 + $0xa8] sm:$0xf] %vm1205_vm2, %v2449_v17 }
 0x10a   :  { %v1910_v44 = vpop.eup %1909  ;;  %v766_v8 = vmul.f32 0.5, %v1908_v29  ;;  %1929 = vtanh.f32 %v645_v46  ;;  %v2457_v16 = vpop.f32.mrb[25].mxu0  ;;  %v925_v58 = vmul.f32 %v861_v15, %v2201_v21 }
 0x10b   :  { %3252 = vst [vmem:[#allocation8_spill] sm:$0xff] %v2453_v43  ;;  %1272 = vrot.lane.b32.xlu0 %v2255_v9, %s1991_s20  ;;  %v2459_v37 = vpop.f32.mrb[24].mxu1  ;;  %v1912_v25 = vpop.eup %1911  ;;  %v864_v31 = vadd.f32 0.5, %v800_v62  ;;  %v798_v32 = vmul.f32 0.5, %v1910_v44  ;;  %1336 = vrot.lane.b32.xlu1 %v2267_v19, %s1991_s20  ;;  %1931 = vtanh.f32 %v648_v0  ;;  %1214 = vst.msk [vmem:[%s3235_s2 + $0x20] sm:$0xf] %vm1205_vm2, %v2453_v43  ;;  %v896_v36 = vmul.f32 %v2203_v22, %v832_v35 }
 0x10c   :  { %v2469_v9 = vpop.f32.mrb[26].mxu0  ;;  %v2471_v29 = vpop.f32.mrb[25].mxu1  ;;  %v830_v21 = vadd.f32 0.5, %v766_v8  ;;  %v771_v55 = vmul.f32 0.5, %v1912_v25  ;;  %1933 = vtanh.f32 %v646_v1  ;;  %v2483_v39 = vpack.c.bf16 %v925_v58, %v925_v58 }
 0x10d   :  { %v1914_v46 = vpop.eup %1913  ;;  %v2479_v54 = vpop.f32.mrb[27].mxu0  ;;  %v928_v15 = vmul.f32 %v2208_v27, %v864_v31  ;;  %v862_v62 = vadd.f32 0.5, %v798_v32  ;;  %v2488_v43 = vpack.c.bf16 %v896_v36, %v896_v36  ;;  %1935 = vtanh.f32 %v2424_v5 }
 0x10e   :  { %v2481_v19 = vpop.f32.mrb[26].mxu1  ;;  %v1916_v0 = vpop.eup %1915  ;;  %v769_v44 = vmul.f32 0.5, %v1914_v46  ;;  %v894_v22 = vmul.f32 %v830_v21, %v2210_v28  ;;  %v835_v8 = vadd.f32 0.5, %v771_v55  ;;  %1246 = vst.msk [vmem:[%s3235_s2 + $0xa0] sm:$0xf] %vm1205_vm2, %v2483_v39  ;;  %1937 = vtanh.f32 %v2427_v12 }
 0x10f   :  { %v2486_v48 = vpop.f32.mrb[27].mxu1  ;;  %v1918_v3 = vpop.eup %1917  ;;  %v772_v35 = vmul.f32 0.5, %v1916_v0  ;;  %1282 = vrot.lane.b32.xlu0 %v2279_v30, %s1991_s20  ;;  %v2498_v27 = vpack.c.bf16 %v928_v15, %v928_v15  ;;  %v926_v25 = vmul.f32 %v862_v62, %v2216_v34  ;;  %1284 = vrot.lane.b32.xlu1 %v2314_v57, %s1991_s20  ;;  %1217 = vst.msk [vmem:[%s3235_s2 + $0x2c] sm:$0xf] %vm1205_vm2, %v2488_v43  ;;  %1939 = vtanh.f32 %v2434_v18 }
 0x110   :  { %v1920_v1 = vpop.eup %1919  ;;  %v833_v58 = vadd.f32 0.5, %v769_v44  ;;  %v770_v31 = vmul.f32 0.5, %v1918_v3  ;;  %v2508_v30 = vpack.c.bf16 %v894_v22, %v894_v22  ;;  %v899_v32 = vmul.f32 %v2236_v2, %v835_v8 }
 0x111   :  { %v1922_v28 = vpop.eup %1921  ;;  %v836_v46 = vadd.f32 0.5, %v772_v35  ;;  %v803_v36 = vmul.f32 0.5, %v1920_v1  ;;  %1249 = vst.msk [vmem:[%s3235_s2 + $0xac] sm:$0xf] %vm1205_vm2, %v2498_v27  ;;  %v2516_v34 = vpack.c.bf16 %v926_v25, %v926_v25  ;;  %v2519_v0 = vpop.f32.mrb[28].mxu0  ;;  %1941 = vtanh.f32 %v2437_v24 }
 0x112   :  { %v1924_v21 = vpop.eup %1923  ;;  %v897_v57 = vmul.f32 %v833_v58, %v2246_v7  ;;  %v834_v3 = vadd.f32 0.5, %v770_v31  ;;  %v801_v55 = vmul.f32 0.5, %v1922_v28  ;;  %1215 = vst.msk [vmem:[%s3235_s2 + $0x24] sm:$0xf] %vm1205_vm2, %v2508_v30  ;;  %v2526_v2 = vpack.c.bf16 %v899_v32, %v899_v32  ;;  %v2531_v7 = vpop.f32.mrb[29].mxu0 }
 0x113   :  { %v1926_v15 = vpop.eup %1925  ;;  %v900_v62 = vmul.f32 %v2258_v47, %v836_v46  ;;  %v867_v44 = vadd.f32 0.5, %v803_v36  ;;  %v804_v22 = vmul.f32 0.5, %v1924_v21  ;;  %1346 = vrot.lane.b32.xlu0 %v2289_v38, %s1991_s20  ;;  %v2533_v8 = vpop.f32.mrb[28].mxu1  ;;  %1247 = vst.msk [vmem:[%s3235_s2 + $0xa4] sm:$0xf] %vm1205_vm2, %v2516_v34  ;;  %1348 = vrot.lane.b32.xlu1 %v2325_v60, %s1991_s20  ;;  %1943 = vtanh.f32 %v2443_v51 }
 0x114   :  { %v1928_v35 = vpop.eup %1927  ;;  %v2540_v1 = vpack.c.bf16 %v897_v57, %v897_v57  ;;  %v898_v47 = vmul.f32 %v834_v3, %v2270_v50  ;;  %v865_v25 = vadd.f32 0.5, %v801_v55  ;;  %v802_v58 = vmul.f32 0.5, %v1926_v15  ;;  %v2545_v38 = vpop.f32.mrb[30].mxu0  ;;  %1220 = vst.msk [vmem:[%s3235_s2 + $0x38] sm:$0xf] %vm1205_vm2, %v2526_v2 }
 0x115   :  { %3253 = vst [vmem:[#allocation9_spill] sm:$0xff] %v2545_v38  ;;  %v2547_v31 = vpop.f32.mrb[29].mxu1  ;;  %v1930_v28 = vpop.eup %1929  ;;  %v2554_v32 = vpack.c.bf16 %v900_v62, %v900_v62  ;;  %v931_v50 = vmul.f32 %v2248_v45, %v867_v44  ;;  %v868_v46 = vadd.f32 0.5, %v804_v22  ;;  %v775_v36 = vmul.f32 0.5, %v1928_v35 }
 0x116   :  { %v2557_v21 = vpop.f32.mrb[31].mxu0  ;;  %v2559_v60 = vpop.f32.mrb[30].mxu1  ;;  %1218 = vst.msk [vmem:[%s3235_s2 + $0x30] sm:$0xf] %vm1205_vm2, %v2540_v1  ;;  %v2566_v3 = vpack.c.bf16 %v898_v47, %v898_v47  ;;  %v929_v55 = vmul.f32 %v865_v25, %v2260_v14  ;;  %v866_v15 = vadd.f32 0.5, %v802_v58  ;;  %v773_v62 = vmul.f32 0.5, %v1930_v28 }
 0x117   :  { %3254 = vst [vmem:[#allocation10_spill] sm:$0xff] %v2559_v60  ;;  %v1932_v57 = vpop.eup %1931  ;;  %v2569_v45 = vpop.f32.mrb[31].mxu1  ;;  %1221 = vst.msk [vmem:[%s3235_s2 + $0x3c] sm:$0xf] %vm1205_vm2, %v2554_v32  ;;  %v2576_v22 = vpack.c.bf16 %v931_v50, %v931_v50  ;;  %v932_v35 = vmul.f32 %v2272_v26, %v868_v46  ;;  %v839_v60 = vadd.f32 0.5, %v775_v36  ;;  %1278 = vrot.lane.b32.xlu0 %v2297_v53, %s1991_s20  ;;  %1280 = vrot.lane.b32.xlu1 %v2339_v42, %s1991_s20 }
 0x118   :  { %v1934_v44 = vpop.eup %1933  ;;  %v776_v47 = vmul.f32 0.5, %v1932_v57  ;;  %1219 = vst.msk [vmem:[%s3235_s2 + $0x34] sm:$0xf] %vm1205_vm2, %v2566_v3  ;;  %v2586_v14 = vpack.c.bf16 %v929_v55, %v929_v55  ;;  %v930_v25 = vmul.f32 %v866_v15, %v2282_v52  ;;  %v837_v58 = vadd.f32 0.5, %v773_v62 }
 0x119   :  { %v774_v28 = vmul.f32 0.5, %v1934_v44  ;;  %1252 = vst.msk [vmem:[%s3235_s2 + $0xb8] sm:$0xf] %vm1205_vm2, %v2576_v22  ;;  %v2596_v26 = vpack.c.bf16 %v932_v35, %v932_v35  ;;  %v903_v53 = vmul.f32 %v2318_v41, %v839_v60  ;;  %v683_v18 = vmul.f32 0.5, %v2407_v49  ;;  %v1936_v60 = vpop.eup %1935 }
 0x11a   :  { %v840_v50 = vadd.f32 0.5, %v776_v47  ;;  %1250 = vst.msk [vmem:[%s3235_s2 + $0xb0] sm:$0xf] %vm1205_vm2, %v2586_v14  ;;  %v2605_v52 = vpack.c.bf16 %v930_v25, %v930_v25  ;;  %v901_v42 = vmul.f32 %v837_v58, %v2330_v61  ;;  %v652_v61 = vmul.f32 0.5, %v2413_v59  ;;  %v1938_v15 = vpop.eup %1937 }
 0x11b   :  { %v838_v46 = vadd.f32 0.5, %v774_v28  ;;  %1253 = vst.msk [vmem:[%s3235_s2 + $0xbc] sm:$0xf] %vm1205_vm2, %v2596_v26  ;;  %v2614_v41 = vpack.c.bf16 %v903_v53, %v903_v53  ;;  %1342 = vrot.lane.b32.xlu0 %v2305_v56, %s1991_s20  ;;  %1344 = vrot.lane.b32.xlu1 %v2353_v11, %s1991_s20  ;;  %1945 = vtanh.f32 %v2447_v33  ;;  %v684_v24 = vmul.f32 0.5, %v2421_v63 }
 0x11c   :  { %v904_v5 = vmul.f32 %v2344_v6, %v840_v50  ;;  %1251 = vst.msk [vmem:[%s3235_s2 + $0xb4] sm:$0xf] %vm1205_vm2, %v2605_v52  ;;  %v2626_v12 = vpack.c.bf16 %v901_v42, %v901_v42  ;;  %v650_v6 = vmul.f32 0.5, %v2419_v4  ;;  %1947 = vtanh.f32 %v652_v61  ;;  %v3255_v61 = vld [vmem:[#allocation8_spill] sm:$0xff] }
 0x11d   :  { %v902_v36 = vmul.f32 %v838_v46, %v2358_v13  ;;  %1224 = vst.msk [vmem:[%s3235_s2 + $0x48] sm:$0xf] %vm1205_vm2, %v2614_v41  ;;  %v681_v13 = vmul.f32 0.5, %v2415_v40  ;;  %v682_v51 = vmul.f32 0.5, %v2429_v10  ;;  %v655_v33 = vmul.f32 0.5, %v2451_v23 }
 0x11e   :  { %v2638_v56 = vpack.c.bf16 %v904_v5, %v904_v5  ;;  %1222 = vst.msk [vmem:[%s3235_s2 + $0x40] sm:$0xf] %vm1205_vm2, %v2626_v12  ;;  %1949 = vtanh.f32 %v650_v6  ;;  %v656_v57 = vmul.f32 0.5, %v2469_v9  ;;  %v654_v55 = vmul.f32 0.5, %v2479_v54 }
 0x11f   :  { %v2647_v11 = vpack.c.bf16 %v902_v36, %v902_v36  ;;  %1290 = vrot.lane.b32.xlu0 %v2367_v20, %s1991_s20  ;;  %1292 = vrot.lane.b32.xlu1 %v2488_v43, %s1991_s20  ;;  %1951 = vtanh.f32 %v683_v18  ;;  %v653_v20 = vmul.f32 0.5, %v2457_v16  ;;  %v687_v43 = vmul.f32 0.5, %v2459_v37  ;;  %v3256_v18 = vld [vmem:[#allocation2_spill] sm:$0xff] }
 0x120   :  { %1225 = vst.msk [vmem:[%s3235_s2 + $0x4c] sm:$0xf] %vm1205_vm2, %v2638_v56  ;;  %1953 = vtanh.f32 %v681_v13  ;;  %v807_v62 = vmul.f32 0.5, %v1936_v60  ;;  %v2677_v44 = vmul.f32 0.5, %v2471_v29  ;;  %v2680_v35 = vmul.f32 0.5, %v2481_v19 }
 0x121   :  { %1223 = vst.msk [vmem:[%s3235_s2 + $0x44] sm:$0xf] %vm1205_vm2, %v2647_v11  ;;  %1955 = vtanh.f32 %v684_v24  ;;  %v805_v47 = vmul.f32 0.5, %v1938_v15  ;;  %v2683_v25 = vmul.f32 0.5, %v2486_v48  ;;  %v2686_v58 = vmul.f32 0.5, %v2519_v0 }
 0x122   :  { %1957 = vtanh.f32 %v682_v51  ;;  %v871_v53 = vadd.f32 0.5, %v807_v62  ;;  %v2694_v36 = vmul.f32 0.5, %v2545_v38 }
 0x123   :  { %1354 = vrot.lane.b32.xlu0 %v2449_v17, %s1991_s20  ;;  %1356 = vrot.lane.b32.xlu1 %v2498_v27, %s1991_s20  ;;  %v1940_v17 = vpop.eup %1939  ;;  %1959 = vtanh.f32 %v655_v33  ;;  %v2689_v27 = vmul.f32 0.5, %v2531_v7  ;;  %v869_v46 = vadd.f32 0.5, %v805_v47  ;;  %v3258_v47 = vld [vmem:[#allocation4_spill] sm:$0xff] }
 0x124   :  { %v1942_v28 = vpop.eup %1941  ;;  %v808_v50 = vmul.f32 0.5, %v1940_v17  ;;  %1961 = vtanh.f32 %v653_v20  ;;  %v935_v13 = vmul.f32 %v3256_v18, %v871_v53  ;;  %v3257_v20 = vld [vmem:[#allocation3_spill] sm:$0xff] }
 0x125   :  { %v1944_v42 = vpop.eup %1943  ;;  %v806_v5 = vmul.f32 0.5, %v1942_v28  ;;  %1963 = vtanh.f32 %v656_v57  ;;  %v933_v60 = vmul.f32 %v869_v46, %v3257_v20 }
 0x126   :  { %v1946_v6 = vpop.eup %1945  ;;  %v872_v24 = vadd.f32 0.5, %v808_v50  ;;  %v779_v51 = vmul.f32 0.5, %v1944_v42  ;;  %1965 = vtanh.f32 %v654_v55  ;;  %v2700_v57 = vpack.c.bf16 %v935_v13, %v935_v13  ;;  %v3259_v42 = vld [vmem:[#allocation5_spill] sm:$0xff] }
 0x127   :  { %1286 = vrot.lane.b32.xlu0 %v3255_v61, %s1991_s20  ;;  %1288 = vrot.lane.b32.xlu1 %v2508_v30, %s1991_s20  ;;  %v1948_v33 = vpop.eup %1947  ;;  %v870_v15 = vadd.f32 0.5, %v806_v5  ;;  %v777_v62 = vmul.f32 0.5, %v1946_v6  ;;  %1967 = vtanh.f32 %v687_v43  ;;  %v2703_v50 = vpack.c.bf16 %v933_v60, %v933_v60  ;;  %v3260_v5 = vld [vmem:[#allocation6_spill] sm:$0xff] }
 0x128   :  { %v1950_v17 = vpop.eup %1949  ;;  %v936_v28 = vmul.f32 %v3258_v47, %v872_v24  ;;  %v843_v61 = vadd.f32 0.5, %v779_v51  ;;  %v780_v38 = vmul.f32 0.5, %v1948_v33  ;;  %1256 = vst.msk [vmem:[%s3235_s2 + $0xc8] sm:$0xf] %vm1205_vm2, %v2700_v57  ;;  %v3261_v33 = vld [vmem:[#allocation7_spill] sm:$0xff]  ;;  %1969 = vtanh.f32 %v2677_v44 }
 0x129   :  { %v1952_v53 = vpop.eup %1951  ;;  %v934_v18 = vmul.f32 %v870_v15, %v3259_v42  ;;  %v841_v30 = vadd.f32 0.5, %v777_v62  ;;  %v778_v55 = vmul.f32 0.5, %v1950_v17  ;;  %1254 = vst.msk [vmem:[%s3235_s2 + $0xc0] sm:$0xf] %vm1205_vm2, %v2703_v50  ;;  %1971 = vtanh.f32 %v2680_v35 }
 0x12a   :  { %v1954_v46 = vpop.eup %1953  ;;  %v2713_v43 = vpack.c.bf16 %v936_v28, %v936_v28  ;;  %v907_v6 = vmul.f32 %v3260_v5, %v843_v61  ;;  %v844_v13 = vadd.f32 0.5, %v780_v38  ;;  %v811_v24 = vmul.f32 0.5, %v1952_v53 }
 0x12b   :  { %1350 = vrot.lane.b32.xlu0 %v2483_v39, %s1991_s20  ;;  %1352 = vrot.lane.b32.xlu1 %v2516_v34, %s1991_s20  ;;  %v1956_v51 = vpop.eup %1955  ;;  %v2723_v39 = vpack.c.bf16 %v934_v18, %v934_v18  ;;  %v905_v20 = vmul.f32 %v841_v30, %v3261_v33  ;;  %v842_v60 = vadd.f32 0.5, %v778_v55  ;;  %v809_v15 = vmul.f32 0.5, %v1954_v46 }
 0x12c   :  { %v1958_v62 = vpop.eup %1957  ;;  %1257 = vst.msk [vmem:[%s3235_s2 + $0xcc] sm:$0xf] %vm1205_vm2, %v2713_v43  ;;  %v2731_v34 = vpack.c.bf16 %v907_v6, %v907_v6  ;;  %v908_v38 = vmul.f32 %v2413_v59, %v844_v13  ;;  %v875_v17 = vadd.f32 0.5, %v811_v24  ;;  %v812_v47 = vmul.f32 0.5, %v1956_v51 }
 0x12d   :  { %v1960_v28 = vpop.eup %1959  ;;  %1255 = vst.msk [vmem:[%s3235_s2 + $0xc4] sm:$0xf] %vm1205_vm2, %v2723_v39  ;;  %v2739_v61 = vpack.c.bf16 %v905_v20, %v905_v20  ;;  %v906_v53 = vmul.f32 %v842_v60, %v2419_v4  ;;  %v873_v42 = vadd.f32 0.5, %v809_v15  ;;  %v810_v18 = vmul.f32 0.5, %v1958_v62 }
 0x12e   :  { %v1962_v30 = vpop.eup %1961  ;;  %1228 = vst.msk [vmem:[%s3235_s2 + $0x58] sm:$0xf] %vm1205_vm2, %v2731_v34  ;;  %v2749_v59 = vpack.c.bf16 %v908_v38, %v908_v38  ;;  %v939_v55 = vmul.f32 %v2407_v49, %v875_v17  ;;  %v876_v46 = vadd.f32 0.5, %v812_v47  ;;  %v783_v4 = vmul.f32 0.5, %v1960_v28 }
 0x12f   :  { %1298 = vrot.lane.b32.xlu0 %v2526_v2, %s1991_s20  ;;  %1300 = vrot.lane.b32.xlu1 %v2554_v32, %s1991_s20  ;;  %v1964_v5 = vpop.eup %1963  ;;  %1226 = vst.msk [vmem:[%s3235_s2 + $0x50] sm:$0xf] %vm1205_vm2, %v2739_v61  ;;  %v2759_v2 = vpack.c.bf16 %v906_v53, %v906_v53  ;;  %v937_v6 = vmul.f32 %v873_v42, %v2415_v40  ;;  %v874_v13 = vadd.f32 0.5, %v810_v18  ;;  %v781_v24 = vmul.f32 0.5, %v1962_v30 }
 0x130   :  { %v1966_v51 = vpop.eup %1965  ;;  %1229 = vst.msk [vmem:[%s3235_s2 + $0x5c] sm:$0xf] %vm1205_vm2, %v2749_v59  ;;  %v2767_v49 = vpack.c.bf16 %v939_v55, %v939_v55  ;;  %v940_v32 = vmul.f32 %v2421_v63, %v876_v46  ;;  %v847_v33 = vadd.f32 0.5, %v783_v4  ;;  %v784_v20 = vmul.f32 0.5, %v1964_v5 }
 0x131   :  { %v1968_v60 = vpop.eup %1967  ;;  %1227 = vst.msk [vmem:[%s3235_s2 + $0x54] sm:$0xf] %vm1205_vm2, %v2759_v2  ;;  %v2775_v40 = vpack.c.bf16 %v937_v6, %v937_v6  ;;  %v938_v15 = vmul.f32 %v874_v13, %v2429_v10  ;;  %v845_v62 = vadd.f32 0.5, %v781_v24  ;;  %v782_v38 = vmul.f32 0.5, %v1966_v51 }
 0x132   :  { %1260 = vst.msk [vmem:[%s3235_s2 + $0xd8] sm:$0xf] %vm1205_vm2, %v2767_v49  ;;  %v2785_v63 = vpack.c.bf16 %v940_v32, %v940_v32  ;;  %v911_v17 = vmul.f32 %v2451_v23, %v847_v33  ;;  %v848_v47 = vadd.f32 0.5, %v784_v20  ;;  %v815_v10 = vmul.f32 0.5, %v1968_v60 }
 0x133   :  { %1362 = vrot.lane.b32.xlu0 %v2576_v22, %s1991_s20  ;;  %1364 = vrot.lane.b32.xlu1 %v2596_v26, %s1991_s20  ;;  %1258 = vst.msk [vmem:[%s3235_s2 + $0xd0] sm:$0xf] %vm1205_vm2, %v2775_v40  ;;  %v2795_v22 = vpack.c.bf16 %v938_v15, %v938_v15  ;;  %v909_v28 = vmul.f32 %v845_v62, %v2457_v16  ;;  %v846_v53 = vadd.f32 0.5, %v782_v38  ;;  %1973 = vtanh.f32 %v2683_v25 }
 0x134   :  { %1261 = vst.msk [vmem:[%s3235_s2 + $0xdc] sm:$0xf] %vm1205_vm2, %v2785_v63  ;;  %v2804_v23 = vpack.c.bf16 %v911_v17, %v911_v17  ;;  %v912_v26 = vmul.f32 %v2469_v9, %v848_v47  ;;  %v879_v42 = vadd.f32 0.5, %v815_v10  ;;  %v658_v9 = vmul.f32 0.5, %v2557_v21 }
 0x135   :  { %1259 = vst.msk [vmem:[%s3235_s2 + $0xd4] sm:$0xf] %vm1205_vm2, %v2795_v22  ;;  %v2813_v16 = vpack.c.bf16 %v909_v28, %v909_v28  ;;  %v910_v44 = vmul.f32 %v846_v53, %v2479_v54  ;;  %1975 = vtanh.f32 %v2686_v58  ;;  %v691_v54 = vmul.f32 0.5, %v2533_v8 }
 0x136   :  { %1232 = vst.msk [vmem:[%s3235_s2 + $0x68] sm:$0xf] %vm1205_vm2, %v2804_v23  ;;  %v2825_v35 = vpack.c.bf16 %v912_v26, %v912_v26  ;;  %v943_v18 = vmul.f32 %v2459_v37, %v879_v42  ;;  %1977 = vtanh.f32 %v2689_v27  ;;  %v689_v25 = vmul.f32 0.5, %v2547_v31 }
 0x137   :  { %1294 = vrot.lane.b32.xlu0 %v2540_v1, %s1991_s20  ;;  %1296 = vrot.lane.b32.xlu1 %v2566_v3, %s1991_s20  ;;  %1230 = vst.msk [vmem:[%s3235_s2 + $0x60] sm:$0xf] %vm1205_vm2, %v2813_v16  ;;  %v2837_v1 = vpack.c.bf16 %v910_v44, %v910_v44  ;;  %1979 = vtanh.f32 %v2694_v36  ;;  %v3262_v3 = vld [vmem:[#allocation10_spill] sm:$0xff]  ;;  %v690_v27 = vmul.f32 0.5, %v2569_v45  ;;  %v1970_v36 = vpop.eup %1969 }
 0x138   :  { %1233 = vst.msk [vmem:[%s3235_s2 + $0x6c] sm:$0xf] %vm1205_vm2, %v2825_v35  ;;  %v2846_v37 = vpack.c.bf16 %v943_v18, %v943_v18  ;;  %v692_v58 = vmul.f32 0.5, %v3262_v3  ;;  %1981 = vtanh.f32 %v658_v9  ;;  %v813_v30 = vmul.f32 0.5, %v1970_v36  ;;  %v3263_v9 = vld [vmem:[#allocation9_spill] sm:$0xff] }
 0x139   :  { %1231 = vst.msk [vmem:[%s3235_s2 + $0x64] sm:$0xf] %vm1205_vm2, %v2837_v1  ;;  %1983 = vtanh.f32 %v691_v54 }
 0x13a   :  { %1264 = vst.msk [vmem:[%s3235_s2 + $0xe8] sm:$0xf] %vm1205_vm2, %v2846_v37  ;;  %1985 = vtanh.f32 %v689_v25  ;;  %v877_v5 = vadd.f32 0.5, %v813_v30 }
 0x13b   :  { %1358 = vrot.lane.b32.xlu0 %v2586_v14, %s1991_s20  ;;  %1360 = vrot.lane.b32.xlu1 %v2605_v52, %s1991_s20  ;;  %1987 = vtanh.f32 %v692_v58  ;;  %v1972_v14 = vpop.eup %1971 }
 0x13c   :  { %1989 = vtanh.f32 %v690_v27  ;;  %v816_v46 = vmul.f32 0.5, %v1972_v14 }
 0x13d   :  { %v1974_v55 = vpop.eup %1973 }
 0x13e   :  { %v814_v6 = vmul.f32 0.5, %v1974_v55  ;;  %v880_v52 = vadd.f32 0.5, %v816_v46 }
 0x13f   :  { %1306 = vrot.lane.b32.xlu0 %v2614_v41, %s1991_s20  ;;  %1308 = vrot.lane.b32.xlu1 %v2638_v56, %s1991_s20  ;;  %v1976_v4 = vpop.eup %1975  ;;  %v941_v41 = vmul.f32 %v877_v5, %v2471_v29 }
 0x140   :  { %v1978_v13 = vpop.eup %1977  ;;  %v787_v24 = vmul.f32 0.5, %v1976_v4  ;;  %v878_v32 = vadd.f32 0.5, %v814_v6  ;;  %v944_v20 = vmul.f32 %v2481_v19, %v880_v52 }
 0x141   :  { %v1980_v51 = vpop.eup %1979  ;;  %v785_v33 = vmul.f32 0.5, %v1978_v13  ;;  %v2875_v38 = vpack.c.bf16 %v941_v41, %v941_v41 }
 0x142   :  { %v1982_v56 = vpop.eup %1981  ;;  %v851_v60 = vadd.f32 0.5, %v787_v24  ;;  %v788_v15 = vmul.f32 0.5, %v1980_v51  ;;  %v942_v17 = vmul.f32 %v878_v32, %v2486_v48  ;;  %v1722_v28 = vpack.c.bf16 %v944_v20, %v944_v20 }
 0x143   :  { %1370 = vrot.lane.b32.xlu0 %v2700_v57, %s1991_s20  ;;  %1372 = vrot.lane.b32.xlu1 %v2713_v43, %s1991_s20  ;;  %v1984_v62 = vpop.eup %1983  ;;  %v849_v57 = vadd.f32 0.5, %v785_v33  ;;  %v786_v47 = vmul.f32 0.5, %v1982_v56  ;;  %1262 = vst.msk [vmem:[%s3235_s2 + $0xe0] sm:$0xf] %vm1205_vm2, %v2875_v38 }
 0x144   :  { %v1986_v10 = vpop.eup %1985  ;;  %v915_v29 = vmul.f32 %v2519_v0, %v851_v60  ;;  %v852_v53 = vadd.f32 0.5, %v788_v15  ;;  %v819_v43 = vmul.f32 0.5, %v1984_v62  ;;  %v1720_v19 = vpack.c.bf16 %v942_v17, %v942_v17  ;;  %1265 = vst.msk [vmem:[%s3235_s2 + $0xec] sm:$0xf] %vm1205_vm2, %v1722_v28 }
 0x145   :  { %v1988_v26 = vpop.eup %1987  ;;  %v913_v48 = vmul.f32 %v849_v57, %v2531_v7  ;;  %v850_v42 = vadd.f32 0.5, %v786_v47  ;;  %v817_v0 = vmul.f32 0.5, %v1986_v10 }
 0x146   :  { %v1990_v44 = vpop.eup %1989  ;;  %v916_v18 = vmul.f32 %v3263_v9, %v852_v53  ;;  %v883_v54 = vadd.f32 0.5, %v819_v43  ;;  %v820_v25 = vmul.f32 0.5, %v1988_v26  ;;  %1263 = vst.msk [vmem:[%s3235_s2 + $0xe4] sm:$0xf] %vm1205_vm2, %v1720_v19 }
 0x147   :  { %1302 = vrot.lane.b32.xlu0 %v2626_v12, %s1991_s20  ;;  %1304 = vrot.lane.b32.xlu1 %v2647_v11, %s1991_s20  ;;  %v1693_v12 = vpack.c.bf16 %v915_v29, %v915_v29  ;;  %v1691_v7 = vpack.c.bf16 %v913_v48, %v913_v48  ;;  %v914_v11 = vmul.f32 %v850_v42, %v2557_v21  ;;  %v881_v58 = vadd.f32 0.5, %v817_v0 }
 0x148   :  { %v818_v27 = vmul.f32 0.5, %v1990_v44  ;;  %v1694_v36 = vpack.c.bf16 %v916_v18, %v916_v18  ;;  %v947_v14 = vmul.f32 %v2533_v8, %v883_v54  ;;  %v884_v30 = vadd.f32 0.5, %v820_v25 }
 0x149   :  { %1236 = vst.msk [vmem:[%s3235_s2 + $0x78] sm:$0xf] %vm1205_vm2, %v1693_v12  ;;  %1234 = vst.msk [vmem:[%s3235_s2 + $0x70] sm:$0xf] %vm1205_vm2, %v1691_v7  ;;  %v1692_v21 = vpack.c.bf16 %v914_v11, %v914_v11  ;;  %v945_v55 = vmul.f32 %v881_v58, %v2547_v31 }
 0x14a   :  { %v882_v46 = vadd.f32 0.5, %v818_v27  ;;  %1237 = vst.msk [vmem:[%s3235_s2 + $0x7c] sm:$0xf] %vm1205_vm2, %v1694_v36  ;;  %v1725_v8 = vpack.c.bf16 %v947_v14, %v947_v14 }
 0x14b   :  { %1366 = vrot.lane.b32.xlu0 %v2703_v50, %s1991_s20  ;;  %1368 = vrot.lane.b32.xlu1 %v2723_v39, %s1991_s20  ;;  %v948_v50 = vmul.f32 %v3262_v3, %v884_v30  ;;  %1235 = vst.msk [vmem:[%s3235_s2 + $0x74] sm:$0xf] %vm1205_vm2, %v1692_v21  ;;  %v1723_v4 = vpack.c.bf16 %v945_v55, %v945_v55 }
 0x14c   :  { %v946_v31 = vmul.f32 %v882_v46, %v2569_v45  ;;  %1268 = vst.msk [vmem:[%s3235_s2 + $0xf8] sm:$0xf] %vm1205_vm2, %v1725_v8 }
 0x14d   :  { %v1726_v39 = vpack.c.bf16 %v948_v50, %v948_v50  ;;  %1266 = vst.msk [vmem:[%s3235_s2 + $0xf0] sm:$0xf] %vm1205_vm2, %v1723_v4 }
 0x14e   :  { %v1724_v3 = vpack.c.bf16 %v946_v31, %v946_v31 }
 0x14f   :  { %1314 = vrot.lane.b32.xlu0 %v2731_v34, %s1991_s20  ;;  %1316 = vrot.lane.b32.xlu1 %v2749_v59, %s1991_s20  ;;  %1269 = vst.msk [vmem:[%s3235_s2 + $0xfc] sm:$0xf] %vm1205_vm2, %v1726_v39 }
 0x150   :  { %1267 = vst.msk [vmem:[%s3235_s2 + $0xf4] sm:$0xf] %vm1205_vm2, %v1724_v3 }
 0x153   :  { %1378 = vrot.lane.b32.xlu0 %v2767_v49, %s1991_s20  ;;  %1380 = vrot.lane.b32.xlu1 %v2785_v63, %s1991_s20 }
 0x157   :  { %1310 = vrot.lane.b32.xlu0 %v2739_v61, %s1991_s20  ;;  %1312 = vrot.lane.b32.xlu1 %v2759_v2, %s1991_s20 }
 0x15b   :  { %1374 = vrot.lane.b32.xlu0 %v2775_v40, %s1991_s20  ;;  %1376 = vrot.lane.b32.xlu1 %v2795_v22, %s1991_s20 }
 0x15f   :  { %1322 = vrot.lane.b32.xlu0 %v2804_v23, %s1991_s20  ;;  %1324 = vrot.lane.b32.xlu1 %v2825_v35, %s1991_s20 }
 0x163   :  { %1386 = vrot.lane.b32.xlu0 %v2846_v37, %s1991_s20  ;;  %1388 = vrot.lane.b32.xlu1 %v1722_v28, %s1991_s20 }
 0x167   :  { %1318 = vrot.lane.b32.xlu0 %v2813_v16, %s1991_s20  ;;  %1320 = vrot.lane.b32.xlu1 %v2837_v1, %s1991_s20 }
 0x16b   :  { %1382 = vrot.lane.b32.xlu0 %v2875_v38, %s1991_s20  ;;  %1384 = vrot.lane.b32.xlu1 %v1720_v19, %s1991_s20 }
 0x16f   :  { %1330 = vrot.lane.b32.xlu0 %v1693_v12, %s1991_s20  ;;  %1332 = vrot.lane.b32.xlu1 %v1694_v36, %s1991_s20 }
 0x171   :  { %v1339_v45 = vpop.permute.xlu0 %1338  ;;  %v1275_v34 = vpop.permute.xlu1 %1274 }
 0x172   :  { %1497 = vst.msk [vmem:[%s3236_s3 + $0x88] sm:$0xf] %vm1462_vm3, %v1339_v45  ;;  %1465 = vst.msk [vmem:[%s3236_s3 + $0x8] sm:$0xf] %vm1462_vm3, %v1275_v34 }
 0x173   :  { %1326 = vrot.lane.b32.xlu0 %v1691_v7, %s1991_s20  ;;  %1328 = vrot.lane.b32.xlu1 %v1692_v21, %s1991_s20 }
 0x175   :  { %v1271_v61 = vpop.permute.xlu0 %1270  ;;  %v1277_v59 = vpop.permute.xlu1 %1276 }
 0x176   :  { %1463 = vst.msk [vmem:[%s3236_s3] sm:$0xf] %vm1462_vm3, %v1271_v61  ;;  %1466 = vst.msk [vmem:[%s3236_s3 + $0xc] sm:$0xf] %vm1462_vm3, %v1277_v59 }
 0x177   :  { %1390 = vrot.lane.b32.xlu0 %v1723_v4, %s1991_s20  ;;  %1392 = vrot.lane.b32.xlu1 %v1724_v3, %s1991_s20 }
 0x179   :  { %v1335_v2 = vpop.permute.xlu0 %1334  ;;  %v1341_v49 = vpop.permute.xlu1 %1340 }
 0x17a   :  { %1495 = vst.msk [vmem:[%s3236_s3 + $0x80] sm:$0xf] %vm1462_vm3, %v1335_v2  ;;  %1498 = vst.msk [vmem:[%s3236_s3 + $0x8c] sm:$0xf] %vm1462_vm3, %v1341_v49 }
 0x17b   :  { %1394 = vrot.lane.b32.xlu0 %v1725_v8, %s1991_s20  ;;  %1396 = vrot.lane.b32.xlu1 %v1726_v39, %s1991_s20 }
 0x17d   :  { %v1273_v40 = vpop.permute.xlu0 %1272  ;;  %v1337_v63 = vpop.permute.xlu1 %1336 }
 0x17e   :  { %1464 = vst.msk [vmem:[%s3236_s3 + $0x4] sm:$0xf] %vm1462_vm3, %v1273_v40  ;;  %1496 = vst.msk [vmem:[%s3236_s3 + $0x84] sm:$0xf] %vm1462_vm3, %v1337_v63 }
 0x181   :  { %v1283_v22 = vpop.permute.xlu0 %1282  ;;  %v1285_v23 = vpop.permute.xlu1 %1284 }
 0x182   :  { %1469 = vst.msk [vmem:[%s3236_s3 + $0x18] sm:$0xf] %vm1462_vm3, %v1283_v22  ;;  %1470 = vst.msk [vmem:[%s3236_s3 + $0x1c] sm:$0xf] %vm1462_vm3, %v1285_v23 }
 0x185   :  { %v1347_v16 = vpop.permute.xlu0 %1346  ;;  %v1349_v35 = vpop.permute.xlu1 %1348 }
 0x186   :  { %1501 = vst.msk [vmem:[%s3236_s3 + $0x98] sm:$0xf] %vm1462_vm3, %v1347_v16  ;;  %1502 = vst.msk [vmem:[%s3236_s3 + $0x9c] sm:$0xf] %vm1462_vm3, %v1349_v35 }
 0x189   :  { %v1279_v1 = vpop.permute.xlu0 %1278  ;;  %v1281_v37 = vpop.permute.xlu1 %1280 }
 0x18a   :  { %1467 = vst.msk [vmem:[%s3236_s3 + $0x10] sm:$0xf] %vm1462_vm3, %v1279_v1  ;;  %1468 = vst.msk [vmem:[%s3236_s3 + $0x14] sm:$0xf] %vm1462_vm3, %v1281_v37 }
 0x18d   :  { %v1343_v5 = vpop.permute.xlu0 %1342  ;;  %v1345_v6 = vpop.permute.xlu1 %1344 }
 0x18e   :  { %1499 = vst.msk [vmem:[%s3236_s3 + $0x90] sm:$0xf] %vm1462_vm3, %v1343_v5  ;;  %1500 = vst.msk [vmem:[%s3236_s3 + $0x94] sm:$0xf] %vm1462_vm3, %v1345_v6 }
 0x191   :  { %v1291_v13 = vpop.permute.xlu0 %1290  ;;  %v1293_v52 = vpop.permute.xlu1 %1292 }
 0x192   :  { %1473 = vst.msk [vmem:[%s3236_s3 + $0x28] sm:$0xf] %vm1462_vm3, %v1291_v13  ;;  %1474 = vst.msk [vmem:[%s3236_s3 + $0x2c] sm:$0xf] %vm1462_vm3, %v1293_v52 }
 0x195   :  { %v1355_v24 = vpop.permute.xlu0 %1354  ;;  %v1357_v51 = vpop.permute.xlu1 %1356 }
 0x196   :  { %1505 = vst.msk [vmem:[%s3236_s3 + $0xa8] sm:$0xf] %vm1462_vm3, %v1355_v24  ;;  %1506 = vst.msk [vmem:[%s3236_s3 + $0xac] sm:$0xf] %vm1462_vm3, %v1357_v51 }
 0x199   :  { %v1287_v41 = vpop.permute.xlu0 %1286  ;;  %v1289_v32 = vpop.permute.xlu1 %1288 }
 0x19a   :  { %1471 = vst.msk [vmem:[%s3236_s3 + $0x20] sm:$0xf] %vm1462_vm3, %v1287_v41  ;;  %1472 = vst.msk [vmem:[%s3236_s3 + $0x24] sm:$0xf] %vm1462_vm3, %v1289_v32 }
 0x19d   :  { %v1351_v33 = vpop.permute.xlu0 %1350  ;;  %v1353_v56 = vpop.permute.xlu1 %1352 }
 0x19e   :  { %1503 = vst.msk [vmem:[%s3236_s3 + $0xa0] sm:$0xf] %vm1462_vm3, %v1351_v33  ;;  %1504 = vst.msk [vmem:[%s3236_s3 + $0xa4] sm:$0xf] %vm1462_vm3, %v1353_v56 }
 0x1a1   :  { %v1299_v20 = vpop.permute.xlu0 %1298  ;;  %v1301_v60 = vpop.permute.xlu1 %1300 }
 0x1a2   :  { %1477 = vst.msk [vmem:[%s3236_s3 + $0x38] sm:$0xf] %vm1462_vm3, %v1299_v20  ;;  %1478 = vst.msk [vmem:[%s3236_s3 + $0x3c] sm:$0xf] %vm1462_vm3, %v1301_v60 }
 0x1a5   :  { %v1363_v15 = vpop.permute.xlu0 %1362  ;;  %v1365_v62 = vpop.permute.xlu1 %1364 }
 0x1a6   :  { %1509 = vst.msk [vmem:[%s3236_s3 + $0xb8] sm:$0xf] %vm1462_vm3, %v1363_v15  ;;  %1510 = vst.msk [vmem:[%s3236_s3 + $0xbc] sm:$0xf] %vm1462_vm3, %v1365_v62 }
 0x1a9   :  { %v1295_v38 = vpop.permute.xlu0 %1294  ;;  %v1297_v17 = vpop.permute.xlu1 %1296 }
 0x1aa   :  { %1475 = vst.msk [vmem:[%s3236_s3 + $0x30] sm:$0xf] %vm1462_vm3, %v1295_v38  ;;  %1476 = vst.msk [vmem:[%s3236_s3 + $0x34] sm:$0xf] %vm1462_vm3, %v1297_v17 }
 0x1ad   :  { %v1359_v57 = vpop.permute.xlu0 %1358  ;;  %v1361_v47 = vpop.permute.xlu1 %1360 }
 0x1ae   :  { %1507 = vst.msk [vmem:[%s3236_s3 + $0xb0] sm:$0xf] %vm1462_vm3, %v1359_v57  ;;  %1508 = vst.msk [vmem:[%s3236_s3 + $0xb4] sm:$0xf] %vm1462_vm3, %v1361_v47 }
 0x1b1   :  { %v1307_v10 = vpop.permute.xlu0 %1306  ;;  %v1309_v28 = vpop.permute.xlu1 %1308 }
 0x1b2   :  { %1481 = vst.msk [vmem:[%s3236_s3 + $0x48] sm:$0xf] %vm1462_vm3, %v1307_v10  ;;  %1482 = vst.msk [vmem:[%s3236_s3 + $0x4c] sm:$0xf] %vm1462_vm3, %v1309_v28 }
 0x1b5   :  { %v1371_v29 = vpop.permute.xlu0 %1370  ;;  %v1373_v53 = vpop.permute.xlu1 %1372 }
 0x1b6   :  { %1513 = vst.msk [vmem:[%s3236_s3 + $0xc8] sm:$0xf] %vm1462_vm3, %v1371_v29  ;;  %1514 = vst.msk [vmem:[%s3236_s3 + $0xcc] sm:$0xf] %vm1462_vm3, %v1373_v53 }
 0x1b9   :  { %v1303_v43 = vpop.permute.xlu0 %1302  ;;  %v1305_v26 = vpop.permute.xlu1 %1304 }
 0x1ba   :  { %1479 = vst.msk [vmem:[%s3236_s3 + $0x40] sm:$0xf] %vm1462_vm3, %v1303_v43  ;;  %1480 = vst.msk [vmem:[%s3236_s3 + $0x44] sm:$0xf] %vm1462_vm3, %v1305_v26 }
 0x1bd   :  { %v1367_v19 = vpop.permute.xlu0 %1366  ;;  %v1369_v48 = vpop.permute.xlu1 %1368 }
 0x1be   :  { %1511 = vst.msk [vmem:[%s3236_s3 + $0xc0] sm:$0xf] %vm1462_vm3, %v1367_v19  ;;  %1512 = vst.msk [vmem:[%s3236_s3 + $0xc4] sm:$0xf] %vm1462_vm3, %v1369_v48 }
 0x1c1   :  { %v1315_v42 = vpop.permute.xlu0 %1314  ;;  %v1317_v0 = vpop.permute.xlu1 %1316 }
 0x1c2   :  { %1485 = vst.msk [vmem:[%s3236_s3 + $0x58] sm:$0xf] %vm1462_vm3, %v1315_v42  ;;  %1486 = vst.msk [vmem:[%s3236_s3 + $0x5c] sm:$0xf] %vm1462_vm3, %v1317_v0 }
 0x1c5   :  { %v1379_v44 = vpop.permute.xlu0 %1378  ;;  %v1381_v12 = vpop.permute.xlu1 %1380 }
 0x1c6   :  { %1517 = vst.msk [vmem:[%s3236_s3 + $0xd8] sm:$0xf] %vm1462_vm3, %v1379_v44  ;;  %1518 = vst.msk [vmem:[%s3236_s3 + $0xdc] sm:$0xf] %vm1462_vm3, %v1381_v12 }
 0x1c9   :  { %v1311_v9 = vpop.permute.xlu0 %1310  ;;  %v1313_v18 = vpop.permute.xlu1 %1312 }
 0x1ca   :  { %1483 = vst.msk [vmem:[%s3236_s3 + $0x50] sm:$0xf] %vm1462_vm3, %v1311_v9  ;;  %1484 = vst.msk [vmem:[%s3236_s3 + $0x54] sm:$0xf] %vm1462_vm3, %v1313_v18 }
 0x1cd   :  { %v1375_v54 = vpop.permute.xlu0 %1374  ;;  %v1377_v25 = vpop.permute.xlu1 %1376 }
 0x1ce   :  { %1515 = vst.msk [vmem:[%s3236_s3 + $0xd0] sm:$0xf] %vm1462_vm3, %v1375_v54  ;;  %1516 = vst.msk [vmem:[%s3236_s3 + $0xd4] sm:$0xf] %vm1462_vm3, %v1377_v25 }
 0x1d1   :  { %v1323_v7 = vpop.permute.xlu0 %1322  ;;  %v1325_v11 = vpop.permute.xlu1 %1324 }
 0x1d2   :  { %1489 = vst.msk [vmem:[%s3236_s3 + $0x68] sm:$0xf] %vm1462_vm3, %v1323_v7  ;;  %1490 = vst.msk [vmem:[%s3236_s3 + $0x6c] sm:$0xf] %vm1462_vm3, %v1325_v11 }
 0x1d5   :  { %v1387_v58 = vpop.permute.xlu0 %1386  ;;  %v1389_v27 = vpop.permute.xlu1 %1388 }
 0x1d6   :  { %1521 = vst.msk [vmem:[%s3236_s3 + $0xe8] sm:$0xf] %vm1462_vm3, %v1387_v58  ;;  %1522 = vst.msk [vmem:[%s3236_s3 + $0xec] sm:$0xf] %vm1462_vm3, %v1389_v27 }
 0x1d9   :  { %v1319_v36 = vpop.permute.xlu0 %1318  ;;  %v1321_v14 = vpop.permute.xlu1 %1320 }
 0x1da   :  { %1487 = vst.msk [vmem:[%s3236_s3 + $0x60] sm:$0xf] %vm1462_vm3, %v1319_v36  ;;  %1488 = vst.msk [vmem:[%s3236_s3 + $0x64] sm:$0xf] %vm1462_vm3, %v1321_v14 }
 0x1dd   :  { %v1383_v30 = vpop.permute.xlu0 %1382  ;;  %v1385_v21 = vpop.permute.xlu1 %1384 }
 0x1de   :  { %1519 = vst.msk [vmem:[%s3236_s3 + $0xe0] sm:$0xf] %vm1462_vm3, %v1383_v30  ;;  %1520 = vst.msk [vmem:[%s3236_s3 + $0xe4] sm:$0xf] %vm1462_vm3, %v1385_v21 }
 0x1e1   :  { %v1331_v55 = vpop.permute.xlu0 %1330  ;;  %v1333_v46 = vpop.permute.xlu1 %1332 }
 0x1e2   :  { %1493 = vst.msk [vmem:[%s3236_s3 + $0x78] sm:$0xf] %vm1462_vm3, %v1331_v55  ;;  %1494 = vst.msk [vmem:[%s3236_s3 + $0x7c] sm:$0xf] %vm1462_vm3, %v1333_v46 }
 0x1e5   :  { %v1327_v8 = vpop.permute.xlu0 %1326  ;;  %v1329_v50 = vpop.permute.xlu1 %1328 }
 0x1e6   :  { %1491 = vst.msk [vmem:[%s3236_s3 + $0x70] sm:$0xf] %vm1462_vm3, %v1327_v8  ;;  %1492 = vst.msk [vmem:[%s3236_s3 + $0x74] sm:$0xf] %vm1462_vm3, %v1329_v50 }
 0x1e9   :  { %v1391_v4 = vpop.permute.xlu0 %1390  ;;  %v1393_v31 = vpop.permute.xlu1 %1392 }
 0x1ea   :  { %1523 = vst.msk [vmem:[%s3236_s3 + $0xf0] sm:$0xf] %vm1462_vm3, %v1391_v4  ;;  %1524 = vst.msk [vmem:[%s3236_s3 + $0xf4] sm:$0xf] %vm1462_vm3, %v1393_v31 }
 0x1ed   :  { %v1395_v39 = vpop.permute.xlu0 %1394  ;;  %v1397_v3 = vpop.permute.xlu1 %1396 }
 0x1ee   :  { %1525 = vst.msk [vmem:[%s3236_s3 + $0xf8] sm:$0xf] %vm1462_vm3, %v1395_v39  ;;  %1526 = vst.msk [vmem:[%s3236_s3 + $0xfc] sm:$0xf] %vm1462_vm3, %v1397_v3 }

</bundles_post_ra>
